<compile_context>
chip_gen: v7x
topology: tpu7x:2x2x1
jax: 0.10.0
libtpu: 0.0.40
codegen_flags: <defaults>
</compile_context>

<pallas_src>
import functools

import jax
import jax.numpy as jnp
from jax.experimental import pallas as pl
from jax.experimental.pallas import tpu as pltpu


# ----------------------------------------------------------------------------
# Tiling configuration
# ----------------------------------------------------------------------------

TM = 256           # rows per tile (multiple of 8)
TN = 256           # output lanes per tile (multiple of 128; feeds 256x256 MXU)
TK = 512           # K tile when K is large (multiple of 128)
K_FULL_MAX = 1024  # contract over the full K in one block up to this size
VMEM_LIMIT = 32 * 1024 * 1024


def _round_up(x, m):
    return ((x + m - 1) // m) * m


# ----------------------------------------------------------------------------
# Fused matmul kernels: out = act(x @ w + b [+ residual])
# ----------------------------------------------------------------------------

def _epilogue(acc_f32, b_ref, r_ref, o_ref, act, has_residual):
    out = acc_f32 + b_ref[...]
    if has_residual:
        out = out + r_ref[...].astype(jnp.float32)
    if act == "relu":
        out = jnp.maximum(out, 0.0)
    o_ref[...] = out.astype(o_ref.dtype)


def _mm_kernel_full_k(act, has_residual):
    """2-D grid (i, j): whole K contracted in one block, no scratch."""

    def body(x_ref, w_ref, b_ref, r_ref, o_ref):
        acc = jnp.dot(x_ref[...], w_ref[...], preferred_element_type=jnp.float32)
        _epilogue(acc, b_ref, r_ref, o_ref, act, has_residual)

    if has_residual:
        def kernel(x_ref, w_ref, b_ref, r_ref, o_ref):
            body(x_ref, w_ref, b_ref, r_ref, o_ref)
    else:
        def kernel(x_ref, w_ref, b_ref, o_ref):
            body(x_ref, w_ref, b_ref, None, o_ref)
    return kernel


def _mm_kernel_tiled_k(act, has_residual):
    """3-D grid (i, j, k) with f32 accumulator scratch for large K."""

    def body(x_ref, w_ref, b_ref, r_ref, o_ref, acc_ref):
        k = pl.program_id(2)

        @pl.when(k == 0)
        def _init():
            acc_ref[...] = jnp.zeros_like(acc_ref)

        acc_ref[...] += jnp.dot(x_ref[...], w_ref[...],
                                preferred_element_type=jnp.float32)

        @pl.when(k == pl.num_programs(2) - 1)
        def _finalize():
            _epilogue(acc_ref[...], b_ref, r_ref, o_ref, act, has_residual)

    if has_residual:
        def kernel(x_ref, w_ref, b_ref, r_ref, o_ref, acc_ref):
            body(x_ref, w_ref, b_ref, r_ref, o_ref, acc_ref)
    else:
        def kernel(x_ref, w_ref, b_ref, o_ref, acc_ref):
            body(x_ref, w_ref, b_ref, None, o_ref, acc_ref)
    return kernel


def pallas_matmul(x, w, b, n_out, *, act=None, residual=None,
                  out_dtype=jnp.bfloat16):
    """out[:M, :n_out] = act(x @ w + b [+ residual]).

    x: (M, K) activations (any float dtype; cast to bf16 here).
    w: (K, Np) bf16 weights, pre-padded so Np is a multiple of 128.
    b: (1, Np) f32 bias, pre-padded.
    residual: optional (M, n_out) tensor fused into the epilogue before act.
    """
    M, K = x.shape
    Kw, Np = w.shape
    assert Kw == K and Np % 128 == 0

    # Row (M) tiling.
    tm = min(TM, _round_up(M, 8))
    Mp = _round_up(M, tm)
    # Output-lane (N) tiling (Np is already a multiple of 128).
    tn = min(TN, Np)
    if Np % tn:
        tn = 128
    # Contraction (K): full-K block for small K (no padding; BlockSpec dims
    # equal to the full array dim are exempt from the (8,128) rule), otherwise
    # tile + accumulate over a k grid axis.
    if K <= K_FULL_MAX:
        tk, Kp = K, K
    else:
        tk = TK
        Kp = _round_up(K, tk)
    nk = Kp // tk

    xp = x.astype(jnp.bfloat16)
    if Mp != M or Kp != K:
        xp = jnp.pad(xp, ((0, Mp - M), (0, Kp - K)))
    wp = w.astype(jnp.bfloat16)
    if Kp != K:
        wp = jnp.pad(wp, ((0, Kp - K), (0, 0)))
    bp = b.astype(jnp.float32)

    has_res = residual is not None
    operands = [xp, wp, bp]
    if has_res:
        rp = residual.astype(jnp.bfloat16)
        if Mp != M or Np != n_out:
            rp = jnp.pad(rp, ((0, Mp - M), (0, Np - n_out)))
        operands.append(rp)

    if nk == 1:
        in_specs = [
            pl.BlockSpec((tm, tk), lambda i, j: (i, 0)),
            pl.BlockSpec((tk, tn), lambda i, j: (0, j)),
            pl.BlockSpec((1, tn), lambda i, j: (0, j)),
        ]
        if has_res:
            in_specs.append(pl.BlockSpec((tm, tn), lambda i, j: (i, j)))
        out = pl.pallas_call(
            _mm_kernel_full_k(act, has_res),
            out_shape=jax.ShapeDtypeStruct((Mp, Np), out_dtype),
            grid=(Mp // tm, Np // tn),
            in_specs=in_specs,
            out_specs=pl.BlockSpec((tm, tn), lambda i, j: (i, j)),
            compiler_params=pltpu.CompilerParams(
                dimension_semantics=("parallel", "parallel"),
                vmem_limit_bytes=VMEM_LIMIT),
        )(*operands)
    else:
        in_specs = [
            pl.BlockSpec((tm, tk), lambda i, j, k: (i, k)),
            pl.BlockSpec((tk, tn), lambda i, j, k: (k, j)),
            pl.BlockSpec((1, tn), lambda i, j, k: (0, j)),
        ]
        if has_res:
            in_specs.append(pl.BlockSpec((tm, tn), lambda i, j, k: (i, j)))
        out = pl.pallas_call(
            _mm_kernel_tiled_k(act, has_res),
            out_shape=jax.ShapeDtypeStruct((Mp, Np), out_dtype),
            grid=(Mp // tm, Np // tn, nk),
            in_specs=in_specs,
            out_specs=pl.BlockSpec((tm, tn), lambda i, j, k: (i, j)),
            scratch_shapes=[pltpu.VMEM((tm, tn), jnp.float32)],
            compiler_params=pltpu.CompilerParams(
                dimension_semantics=("parallel", "parallel", "arbitrary"),
                vmem_limit_bytes=VMEM_LIMIT),
        )(*operands)

    if Mp == M and Np == n_out:
        return out
    return out[:M, :n_out]


# ----------------------------------------------------------------------------
# Bilinear upsample kernel (align_corners=True):  out[b] = Ry @ X[b] @ Rx^T
# ----------------------------------------------------------------------------

def _upsample_kernel(ry_ref, rxt_ref, x_ref, o_ref):
    x = x_ref[...][0].astype(jnp.float32)                              # (Hi, Wi)
    t = jnp.dot(ry_ref[...], x, preferred_element_type=jnp.float32)    # (Ho, Wi)
    o = jnp.dot(t, rxt_ref[...], preferred_element_type=jnp.float32)   # (Ho, Wo)
    o_ref[...] = o[None]


def _interp_matrix(out_size, in_size):
    """Row-stochastic bilinear interpolation matrix, align_corners=True."""
    if in_size == 1:
        return jnp.ones((out_size, 1), jnp.float32)
    src = jnp.arange(out_size, dtype=jnp.float32) * (in_size - 1) / (out_size - 1)
    i0 = jnp.clip(jnp.floor(src).astype(jnp.int32), 0, in_size - 2)
    w1 = src - i0.astype(jnp.float32)
    rows = jnp.arange(out_size)
    m = jnp.zeros((out_size, in_size), jnp.float32)
    m = m.at[rows, i0].add(1.0 - w1)
    m = m.at[rows, i0 + 1].add(w1)
    return m


def pallas_bilinear_upsample(x, Ho, Wo):
    """x: (N, Hi, Wi) -> (N, Ho, Wo), bilinear, align_corners=True.

    Both interpolation matmuls are fused in one kernel on VMEM-resident tiles
    (one grid step per batch element); no host-side transpose copies.
    """
    N, Hi, Wi = x.shape
    ry = _interp_matrix(Ho, Hi)                    # (Ho, Hi)
    rxt = jnp.transpose(_interp_matrix(Wo, Wi))    # (Wi, Wo)
    return pl.pallas_call(
        _upsample_kernel,
        out_shape=jax.ShapeDtypeStruct((N, Ho, Wo), jnp.float32),
        grid=(N,),
        in_specs=[
            pl.BlockSpec((Ho, Hi), lambda b: (0, 0)),
            pl.BlockSpec((Wi, Wo), lambda b: (0, 0)),
            pl.BlockSpec((1, Hi, Wi), lambda b: (b, 0, 0)),
        ],
        out_specs=pl.BlockSpec((1, Ho, Wo), lambda b: (b, 0, 0)),
        compiler_params=pltpu.CompilerParams(
            dimension_semantics=("parallel",),
            vmem_limit_bytes=VMEM_LIMIT),
    )(ry, rxt, x.astype(jnp.float32))


# ----------------------------------------------------------------------------
# Glue: im2col and parameter packing
# ----------------------------------------------------------------------------

def _im2col_3x3_s2(x):
    """x: (N,H,W,C) NHWC -> (N*Ho*Wo, 9*C) patches for 3x3 conv, stride 2, pad 1.

    TODO(synk): for production resolutions, fuse im2col into the conv kernel
    (halo-aware BlockSpec / in-kernel shifted reads) to avoid materializing the
    9x-expanded patch tensor in HBM.
    """
    N, H, W, C = x.shape
    Ho, Wo = (H + 1) // 2, (W + 1) // 2
    xp = jnp.pad(x, ((0, 0), (1, 1), (1, 1), (0, 0)))
    patches = []
    for dy in range(3):
        for dx in range(3):
            patches.append(xp[:, dy:dy + 2 * Ho:2, dx:dx + 2 * Wo:2, :])
    cols = jnp.stack(patches, axis=3)           # (N, Ho, Wo, 9, C)
    return cols.reshape(N * Ho * Wo, 9 * C), (Ho, Wo)


def _pack_layer(w, b, scale=1.0):
    """Fold |scale| (ScaleLayer) into (w, b), cast w to bf16, pad the output
    channel dim to a multiple of 128 lanes. Done ONCE at init (not per call)."""
    K, N = w.shape
    s = abs(float(scale))
    w = (jnp.asarray(w, jnp.float32) * s).astype(jnp.bfloat16)
    b = (jnp.asarray(b, jnp.float32) * s).reshape(1, N)
    Np = _round_up(N, 128)
    return {"w": jnp.pad(w, ((0, 0), (0, Np - N))),
            "b": jnp.pad(b, ((0, 0), (0, Np - N))),
            "n": N}


def init_params(key, width=48):
    """Deterministic synthetic parameters matching the module's layer shapes."""
    ks = jax.random.split(key, 8)

    def winit(k, shape, fan_in):
        return jax.random.normal(k, shape, jnp.float32) * (1.0 / jnp.sqrt(fan_in))

    p = {}
    # maps_transform: Conv2d(2,16,1) -> ReLU -> Conv2d(16,64,3,s2,p1) -> ScaleLayer(0.05)
    p["mt1"] = _pack_layer(winit(ks[0], (2, 16), 2.0), jnp.zeros((16,)))
    p["mt2"] = _pack_layer(winit(ks[1], (3, 3, 16, 64), 144.0).reshape(144, 64),
                           jnp.zeros((64,)), scale=0.05)   # ScaleLayer folded in

    # Simplified feature extractor (HRNet-style stem + fused 1x1 heads).
    p["stem1"] = _pack_layer(winit(ks[2], (3, 3, 3, 64), 27.0).reshape(27, 64),
                             jnp.zeros((64,)))
    p["stem2"] = _pack_layer(winit(ks[3], (3, 3, 64, width), 576.0).reshape(576, width),
                             jnp.zeros((width,)))
    # head (instances) + aux head fused into one 1x1 conv with 2 output cols.
    hw = jnp.concatenate([winit(ks[4], (width, 1), float(width)),
                          winit(ks[5], (width, 1), float(width))], axis=1)
    p["head"] = _pack_layer(hw, jnp.zeros((2,)))
    return p


# ----------------------------------------------------------------------------
# Forward pass (HRNetISModel.forward)
# ----------------------------------------------------------------------------

def hrnet_is_forward(image_nchw, coord_nchw, params):
    image = jnp.transpose(image_nchw, (0, 2, 3, 1)).astype(jnp.bfloat16)   # NHWC
    coord = jnp.transpose(coord_nchw, (0, 2, 3, 1)).astype(jnp.bfloat16)   # NHWC
    N, H, W, _ = image.shape

    # --- maps_transform(coord_features): 1x1 conv+ReLU, 3x3 s2 conv, ScaleLayer ---
    mt1, mt2 = params["mt1"], params["mt2"]
    c = pallas_matmul(coord.reshape(-1, 2), mt1["w"], mt1["b"], mt1["n"], act="relu")
    c = c.reshape(N, H, W, mt1["n"])
    cols, (H2, W2) = _im2col_3x3_s2(c)
    coord_feat = pallas_matmul(cols, mt2["w"], mt2["b"], mt2["n"])   # (N*H2*W2, 64)

    # --- backbone_forward ---
    # TODO(synk): full HighResolutionNet + OCR backbone source was not provided;
    # replaced by a representative HRNet-style stem (3x3 s2 conv with the
    # coord-feature residual + ReLU fused into the epilogue, then 3x3 s2 conv
    # + ReLU) and a fused 1x1 head producing (instances, instances_aux).
    st1, st2, hd = params["stem1"], params["stem2"], params["head"]
    cols, _ = _im2col_3x3_s2(image)
    f = pallas_matmul(cols, st1["w"], st1["b"], st1["n"],
                      act="relu", residual=coord_feat)               # fused add+ReLU
    cols, (H4, W4) = _im2col_3x3_s2(f.reshape(N, H2, W2, st1["n"]))
    g = pallas_matmul(cols, st2["w"], st2["b"], st2["n"], act="relu")
    logits = pallas_matmul(g, hd["w"], hd["b"], hd["n"], out_dtype=jnp.float32)
    instances = logits[:, 0].reshape(N, H4, W4)   # column 1 = instances_aux, unused by forward()

    # --- F.interpolate(instances, size=image HxW, mode='bilinear', align_corners=True) ---
    out = pallas_bilinear_upsample(instances, H, W)    # (N, H, W) f32
    return out[:, None, :, :]                          # (N,1,H,W) NCHW, like PyTorch


if __name__ == "__main__":
    key = jax.random.PRNGKey(0)
    k_img, k_coord, k_params = jax.random.split(key, 3)

    # small shapes consistent with the module: image (N,3,H,W), coord (N,2,H,W)
    image = jax.random.normal(k_img, (2, 3, 16, 16), jnp.float32)
    coord_features = jax.random.normal(k_coord, (2, 2, 16, 16), jnp.float32)
    params = init_params(k_params, width=48)

    fwd = jax.jit(functools.partial(hrnet_is_forward, params=params))
    out = fwd(image, coord_features)
    jax.block_until_ready(out)

    assert out.shape == (2, 1, 16, 16), out.shape
    assert out.dtype == jnp.float32
    assert bool(jnp.all(jnp.isfinite(out)))
    print("KERNEL_OK")
</pallas_src>

<mosaic_0001>
module attributes {stable_mosaic.version = 11 : i64} {
  func.func private @main(%arg0: i32) attributes {dimension_semantics = [#tpu.dimension_semantics<core_parallel>], iteration_bounds = array<i64: 2>, tpu.core_type = #tpu.core_type<sc_scalar_subcore>, window_params = []} {
    return
  }
}

module attributes {stable_mosaic.version = 11 : i64} {
  func.func private @main(%arg0: i32) attributes {dimension_semantics = [#tpu.dimension_semantics<core_parallel>], iteration_bounds = array<i64: 2>, tpu.core_type = #tpu.core_type<sc_scalar_subcore>, window_params = []} {
    return
  }
}

module attributes {stable_mosaic.version = 11 : i64} {
  func.func @kernel(%arg0: i32, %arg1: i32, %arg2: memref<256x2xbf16, #tpu.memory_space<vmem>>, %arg3: memref<2x128xbf16, #tpu.memory_space<vmem>>, %arg4: memref<1x128xf32, #tpu.memory_space<vmem>>, %arg5: memref<256x128xbf16, #tpu.memory_space<vmem>>) attributes {dimension_semantics = [#tpu.dimension_semantics<parallel>, #tpu.dimension_semantics<parallel>], iteration_bounds = array<i64: 2, 1>, scalar_prefetch = 0 : i64, scratch_operands = 0 : i64, tpu.core_type = #tpu.core_type<tc>, window_params = [{transform_indices = @transform_0, window_bounds = array<i64: 256, 2>}, {transform_indices = @transform_1, window_bounds = array<i64: 2, 128>}, {transform_indices = @transform_2, window_bounds = array<i64: 1, 128>}, {transform_indices = @transform_3, window_bounds = array<i64: 256, 128>}]} {
    %c0 = arith.constant 0 : index
    %c0_0 = arith.constant 0 : index
    %0 = vector.load %arg2[%c0, %c0_0] : memref<256x2xbf16, #tpu.memory_space<vmem>>, vector<256x2xbf16>
    %c0_1 = arith.constant 0 : index
    %c0_2 = arith.constant 0 : index
    %1 = vector.load %arg3[%c0_1, %c0_2] : memref<2x128xbf16, #tpu.memory_space<vmem>>, vector<2x128xbf16>
    %cst = arith.constant dense<0.000000e+00> : vector<256x128xf32>
    %2 = tpu.matmul %0, %1, %cst {dimension_numbers = #tpu.dot_dimension_numbers<[1], [0], [0], [1], [0, 0, 1, 1], [], []>} : vector<256x2xbf16>, vector<2x128xbf16>, vector<256x128xf32> -> vector<256x128xf32>
    %c0_3 = arith.constant 0 : index
    %c0_4 = arith.constant 0 : index
    %3 = vector.load %arg4[%c0_3, %c0_4] : memref<1x128xf32, #tpu.memory_space<vmem>>, vector<1x128xf32>
    %4 = vector.broadcast %3 : vector<1x128xf32> to vector<256x128xf32>
    %5 = arith.addf %2, %4 : vector<256x128xf32>
    %cst_5 = arith.constant 0.000000e+00 : f32
    %6 = vector.broadcast %cst_5 : f32 to vector<256x128xf32>
    %7 = arith.maximumf %5, %6 : vector<256x128xf32>
    %8 = arith.truncf %7 : vector<256x128xf32> to vector<256x128xbf16>
    %c0_6 = arith.constant 0 : index
    %c0_7 = arith.constant 0 : index
    %9 = vector.load %arg5[%c0_6, %c0_7] : memref<256x128xbf16, #tpu.memory_space<vmem>>, vector<256x128xbf16>
    tpu.vector_store %arg5[%c0_6, %c0_7], %8 {strides = array<i32>} : memref<256x128xbf16, #tpu.memory_space<vmem>>, vector<256x128xbf16>,
    return
  }
  func.func @transform_0(%arg0: i32, %arg1: i32) -> (i32, i32) {
    %c0_i32 = arith.constant 0 : i32
    %c0_i32_0 = arith.constant 0 : i32
    return %arg0, %c0_i32 : i32, i32
  }
  func.func @transform_1(%arg0: i32, %arg1: i32) -> (i32, i32) {
    %c0_i32 = arith.constant 0 : i32
    %c0_i32_0 = arith.constant 0 : i32
    return %c0_i32, %arg1 : i32, i32
  }
  func.func @transform_2(%arg0: i32, %arg1: i32) -> (i32, i32) {
    %c0_i32 = arith.constant 0 : i32
    %c0_i32_0 = arith.constant 0 : i32
    return %c0_i32, %arg1 : i32, i32
  }
  func.func @transform_3(%arg0: i32, %arg1: i32) -> (i32, i32) {
    %c0_i32 = arith.constant 0 : i32
    return %arg0, %arg1 : i32, i32
  }
}

module attributes {stable_mosaic.version = 11 : i64} {
  func.func @kernel(%arg0: i32, %arg1: i32, %arg2: memref<128x144xbf16, #tpu.memory_space<vmem>>, %arg3: memref<144x128xbf16, #tpu.memory_space<vmem>>, %arg4: memref<1x128xf32, #tpu.memory_space<vmem>>, %arg5: memref<128x128xbf16, #tpu.memory_space<vmem>>) attributes {dimension_semantics = [#tpu.dimension_semantics<parallel>, #tpu.dimension_semantics<parallel>], iteration_bounds = array<i64: 1, 1>, scalar_prefetch = 0 : i64, scratch_operands = 0 : i64, tpu.core_type = #tpu.core_type<tc>, window_params = [{transform_indices = @transform_0, window_bounds = array<i64: 128, 144>}, {transform_indices = @transform_1, window_bounds = array<i64: 144, 128>}, {transform_indices = @transform_2, window_bounds = array<i64: 1, 128>}, {transform_indices = @transform_3, window_bounds = array<i64: 128, 128>}]} {
    %c0 = arith.constant 0 : index
    %c0_0 = arith.constant 0 : index
    %0 = vector.load %arg2[%c0, %c0_0] : memref<128x144xbf16, #tpu.memory_space<vmem>>, vector<128x144xbf16>
    %c0_1 = arith.constant 0 : index
    %c0_2 = arith.constant 0 : index
    %1 = vector.load %arg3[%c0_1, %c0_2] : memref<144x128xbf16, #tpu.memory_space<vmem>>, vector<144x128xbf16>
    %cst = arith.constant dense<0.000000e+00> : vector<128x128xf32>
    %2 = tpu.matmul %0, %1, %cst {dimension_numbers = #tpu.dot_dimension_numbers<[1], [0], [0], [1], [0, 0, 1, 1], [], []>} : vector<128x144xbf16>, vector<144x128xbf16>, vector<128x128xf32> -> vector<128x128xf32>
    %c0_3 = arith.constant 0 : index
    %c0_4 = arith.constant 0 : index
    %3 = vector.load %arg4[%c0_3, %c0_4] : memref<1x128xf32, #tpu.memory_space<vmem>>, vector<1x128xf32>
    %4 = vector.broadcast %3 : vector<1x128xf32> to vector<128x128xf32>
    %5 = arith.addf %2, %4 : vector<128x128xf32>
    %6 = arith.truncf %5 : vector<128x128xf32> to vector<128x128xbf16>
    %c0_5 = arith.constant 0 : index
    %c0_6 = arith.constant 0 : index
    %7 = vector.load %arg5[%c0_5, %c0_6] : memref<128x128xbf16, #tpu.memory_space<vmem>>, vector<128x128xbf16>
    tpu.vector_store %arg5[%c0_5, %c0_6], %6 {strides = array<i32>} : memref<128x128xbf16, #tpu.memory_space<vmem>>, vector<128x128xbf16>,
    return
  }
  func.func @transform_0(%arg0: i32, %arg1: i32) -> (i32, i32) {
    %c0_i32 = arith.constant 0 : i32
    %c0_i32_0 = arith.constant 0 : i32
    return %arg0, %c0_i32 : i32, i32
  }
  func.func @transform_1(%arg0: i32, %arg1: i32) -> (i32, i32) {
    %c0_i32 = arith.constant 0 : i32
    %c0_i32_0 = arith.constant 0 : i32
    return %c0_i32, %arg1 : i32, i32
  }
  func.func @transform_2(%arg0: i32, %arg1: i32) -> (i32, i32) {
    %c0_i32 = arith.constant 0 : i32
    %c0_i32_0 = arith.constant 0 : i32
    return %c0_i32, %arg1 : i32, i32
  }
  func.func @transform_3(%arg0: i32, %arg1: i32) -> (i32, i32) {
    %c0_i32 = arith.constant 0 : i32
    return %arg0, %arg1 : i32, i32
  }
}

module attributes {stable_mosaic.version = 11 : i64} {
  func.func @kernel(%arg0: i32, %arg1: i32, %arg2: memref<128x27xbf16, #tpu.memory_space<vmem>>, %arg3: memref<27x128xbf16, #tpu.memory_space<vmem>>, %arg4: memref<1x128xf32, #tpu.memory_space<vmem>>, %arg5: memref<128x128xbf16, #tpu.memory_space<vmem>>, %arg6: memref<128x128xbf16, #tpu.memory_space<vmem>>) attributes {dimension_semantics = [#tpu.dimension_semantics<parallel>, #tpu.dimension_semantics<parallel>], iteration_bounds = array<i64: 1, 1>, scalar_prefetch = 0 : i64, scratch_operands = 0 : i64, tpu.core_type = #tpu.core_type<tc>, window_params = [{transform_indices = @transform_0, window_bounds = array<i64: 128, 27>}, {transform_indices = @transform_1, window_bounds = array<i64: 27, 128>}, {transform_indices = @transform_2, window_bounds = array<i64: 1, 128>}, {transform_indices = @transform_3, window_bounds = array<i64: 128, 128>}, {transform_indices = @transform_4, window_bounds = array<i64: 128, 128>}]} {
    %c0 = arith.constant 0 : index
    %c0_0 = arith.constant 0 : index
    %0 = vector.load %arg2[%c0, %c0_0] : memref<128x27xbf16, #tpu.memory_space<vmem>>, vector<128x27xbf16>
    %c0_1 = arith.constant 0 : index
    %c0_2 = arith.constant 0 : index
    %1 = vector.load %arg3[%c0_1, %c0_2] : memref<27x128xbf16, #tpu.memory_space<vmem>>, vector<27x128xbf16>
    %cst = arith.constant dense<0.000000e+00> : vector<128x128xf32>
    %2 = tpu.matmul %0, %1, %cst {dimension_numbers = #tpu.dot_dimension_numbers<[1], [0], [0], [1], [0, 0, 1, 1], [], []>} : vector<128x27xbf16>, vector<27x128xbf16>, vector<128x128xf32> -> vector<128x128xf32>
    %c0_3 = arith.constant 0 : index
    %c0_4 = arith.constant 0 : index
    %3 = vector.load %arg4[%c0_3, %c0_4] : memref<1x128xf32, #tpu.memory_space<vmem>>, vector<1x128xf32>
    %4 = vector.broadcast %3 : vector<1x128xf32> to vector<128x128xf32>
    %5 = arith.addf %2, %4 : vector<128x128xf32>
    %c0_5 = arith.constant 0 : index
    %c0_6 = arith.constant 0 : index
    %6 = vector.load %arg5[%c0_5, %c0_6] : memref<128x128xbf16, #tpu.memory_space<vmem>>, vector<128x128xbf16>
    %7 = arith.extf %6 : vector<128x128xbf16> to vector<128x128xf32>
    %8 = arith.addf %5, %7 : vector<128x128xf32>
    %cst_7 = arith.constant 0.000000e+00 : f32
    %9 = vector.broadcast %cst_7 : f32 to vector<128x128xf32>
    %10 = arith.maximumf %8, %9 : vector<128x128xf32>
    %11 = arith.truncf %10 : vector<128x128xf32> to vector<128x128xbf16>
    %c0_8 = arith.constant 0 : index
    %c0_9 = arith.constant 0 : index
    %12 = vector.load %arg6[%c0_8, %c0_9] : memref<128x128xbf16, #tpu.memory_space<vmem>>, vector<128x128xbf16>
    tpu.vector_store %arg6[%c0_8, %c0_9], %11 {strides = array<i32>} : memref<128x128xbf16, #tpu.memory_space<vmem>>, vector<128x128xbf16>,
    return
  }
  func.func @transform_0(%arg0: i32, %arg1: i32) -> (i32, i32) {
    %c0_i32 = arith.constant 0 : i32
    %c0_i32_0 = arith.constant 0 : i32
    return %arg0, %c0_i32 : i32, i32
  }
  func.func @transform_1(%arg0: i32, %arg1: i32) -> (i32, i32) {
    %c0_i32 = arith.constant 0 : i32
    %c0_i32_0 = arith.constant 0 : i32
    return %c0_i32, %arg1 : i32, i32
  }
  func.func @transform_2(%arg0: i32, %arg1: i32) -> (i32, i32) {
    %c0_i32 = arith.constant 0 : i32
    %c0_i32_0 = arith.constant 0 : i32
    return %c0_i32, %arg1 : i32, i32
  }
  func.func @transform_3(%arg0: i32, %arg1: i32) -> (i32, i32) {
    %c0_i32 = arith.constant 0 : i32
    return %arg0, %arg1 : i32, i32
  }
  func.func @transform_4(%arg0: i32, %arg1: i32) -> (i32, i32) {
    %c0_i32 = arith.constant 0 : i32
    return %arg0, %arg1 : i32, i32
  }
}

module attributes {stable_mosaic.version = 11 : i64} {
  func.func @kernel(%arg0: i32, %arg1: i32, %arg2: memref<32x576xbf16, #tpu.memory_space<vmem>>, %arg3: memref<576x128xbf16, #tpu.memory_space<vmem>>, %arg4: memref<1x128xf32, #tpu.memory_space<vmem>>, %arg5: memref<32x128xbf16, #tpu.memory_space<vmem>>) attributes {dimension_semantics = [#tpu.dimension_semantics<parallel>, #tpu.dimension_semantics<parallel>], iteration_bounds = array<i64: 1, 1>, scalar_prefetch = 0 : i64, scratch_operands = 0 : i64, tpu.core_type = #tpu.core_type<tc>, window_params = [{transform_indices = @transform_0, window_bounds = array<i64: 32, 576>}, {transform_indices = @transform_1, window_bounds = array<i64: 576, 128>}, {transform_indices = @transform_2, window_bounds = array<i64: 1, 128>}, {transform_indices = @transform_3, window_bounds = array<i64: 32, 128>}]} {
    %c0 = arith.constant 0 : index
    %c0_0 = arith.constant 0 : index
    %0 = vector.load %arg2[%c0, %c0_0] : memref<32x576xbf16, #tpu.memory_space<vmem>>, vector<32x576xbf16>
    %c0_1 = arith.constant 0 : index
    %c0_2 = arith.constant 0 : index
    %1 = vector.load %arg3[%c0_1, %c0_2] : memref<576x128xbf16, #tpu.memory_space<vmem>>, vector<576x128xbf16>
    %cst = arith.constant dense<0.000000e+00> : vector<32x128xf32>
    %2 = tpu.matmul %0, %1, %cst {dimension_numbers = #tpu.dot_dimension_numbers<[1], [0], [0], [1], [0, 0, 1, 1], [], []>} : vector<32x576xbf16>, vector<576x128xbf16>, vector<32x128xf32> -> vector<32x128xf32>
    %c0_3 = arith.constant 0 : index
    %c0_4 = arith.constant 0 : index
    %3 = vector.load %arg4[%c0_3, %c0_4] : memref<1x128xf32, #tpu.memory_space<vmem>>, vector<1x128xf32>
    %4 = vector.broadcast %3 : vector<1x128xf32> to vector<32x128xf32>
    %5 = arith.addf %2, %4 : vector<32x128xf32>
    %cst_5 = arith.constant 0.000000e+00 : f32
    %6 = vector.broadcast %cst_5 : f32 to vector<32x128xf32>
    %7 = arith.maximumf %5, %6 : vector<32x128xf32>
    %8 = arith.truncf %7 : vector<32x128xf32> to vector<32x128xbf16>
    %c0_6 = arith.constant 0 : index
    %c0_7 = arith.constant 0 : index
    %9 = vector.load %arg5[%c0_6, %c0_7] : memref<32x128xbf16, #tpu.memory_space<vmem>>, vector<32x128xbf16>
    tpu.vector_store %arg5[%c0_6, %c0_7], %8 {strides = array<i32>} : memref<32x128xbf16, #tpu.memory_space<vmem>>, vector<32x128xbf16>,
    return
  }
  func.func @transform_0(%arg0: i32, %arg1: i32) -> (i32, i32) {
    %c0_i32 = arith.constant 0 : i32
    %c0_i32_0 = arith.constant 0 : i32
    return %arg0, %c0_i32 : i32, i32
  }
  func.func @transform_1(%arg0: i32, %arg1: i32) -> (i32, i32) {
    %c0_i32 = arith.constant 0 : i32
    %c0_i32_0 = arith.constant 0 : i32
    return %c0_i32, %arg1 : i32, i32
  }
  func.func @transform_2(%arg0: i32, %arg1: i32) -> (i32, i32) {
    %c0_i32 = arith.constant 0 : i32
    %c0_i32_0 = arith.constant 0 : i32
    return %c0_i32, %arg1 : i32, i32
  }
  func.func @transform_3(%arg0: i32, %arg1: i32) -> (i32, i32) {
    %c0_i32 = arith.constant 0 : i32
    return %arg0, %arg1 : i32, i32
  }
}

module attributes {stable_mosaic.version = 11 : i64} {
  func.func @kernel(%arg0: i32, %arg1: i32, %arg2: memref<32x48xbf16, #tpu.memory_space<vmem>>, %arg3: memref<48x128xbf16, #tpu.memory_space<vmem>>, %arg4: memref<1x128xf32, #tpu.memory_space<vmem>>, %arg5: memref<32x128xf32, #tpu.memory_space<vmem>>) attributes {dimension_semantics = [#tpu.dimension_semantics<parallel>, #tpu.dimension_semantics<parallel>], iteration_bounds = array<i64: 1, 1>, scalar_prefetch = 0 : i64, scratch_operands = 0 : i64, tpu.core_type = #tpu.core_type<tc>, window_params = [{transform_indices = @transform_0, window_bounds = array<i64: 32, 48>}, {transform_indices = @transform_1, window_bounds = array<i64: 48, 128>}, {transform_indices = @transform_2, window_bounds = array<i64: 1, 128>}, {transform_indices = @transform_3, window_bounds = array<i64: 32, 128>}]} {
    %c0 = arith.constant 0 : index
    %c0_0 = arith.constant 0 : index
    %0 = vector.load %arg2[%c0, %c0_0] : memref<32x48xbf16, #tpu.memory_space<vmem>>, vector<32x48xbf16>
    %c0_1 = arith.constant 0 : index
    %c0_2 = arith.constant 0 : index
    %1 = vector.load %arg3[%c0_1, %c0_2] : memref<48x128xbf16, #tpu.memory_space<vmem>>, vector<48x128xbf16>
    %cst = arith.constant dense<0.000000e+00> : vector<32x128xf32>
    %2 = tpu.matmul %0, %1, %cst {dimension_numbers = #tpu.dot_dimension_numbers<[1], [0], [0], [1], [0, 0, 1, 1], [], []>} : vector<32x48xbf16>, vector<48x128xbf16>, vector<32x128xf32> -> vector<32x128xf32>
    %c0_3 = arith.constant 0 : index
    %c0_4 = arith.constant 0 : index
    %3 = vector.load %arg4[%c0_3, %c0_4] : memref<1x128xf32, #tpu.memory_space<vmem>>, vector<1x128xf32>
    %4 = vector.broadcast %3 : vector<1x128xf32> to vector<32x128xf32>
    %5 = arith.addf %2, %4 : vector<32x128xf32>
    %c0_5 = arith.constant 0 : index
    %c0_6 = arith.constant 0 : index
    %6 = vector.load %arg5[%c0_5, %c0_6] : memref<32x128xf32, #tpu.memory_space<vmem>>, vector<32x128xf32>
    tpu.vector_store %arg5[%c0_5, %c0_6], %5 {strides = array<i32>} : memref<32x128xf32, #tpu.memory_space<vmem>>, vector<32x128xf32>,
    return
  }
  func.func @transform_0(%arg0: i32, %arg1: i32) -> (i32, i32) {
    %c0_i32 = arith.constant 0 : i32
    %c0_i32_0 = arith.constant 0 : i32
    return %arg0, %c0_i32 : i32, i32
  }
  func.func @transform_1(%arg0: i32, %arg1: i32) -> (i32, i32) {
    %c0_i32 = arith.constant 0 : i32
    %c0_i32_0 = arith.constant 0 : i32
    return %c0_i32, %arg1 : i32, i32
  }
  func.func @transform_2(%arg0: i32, %arg1: i32) -> (i32, i32) {
    %c0_i32 = arith.constant 0 : i32
    %c0_i32_0 = arith.constant 0 : i32
    return %c0_i32, %arg1 : i32, i32
  }
  func.func @transform_3(%arg0: i32, %arg1: i32) -> (i32, i32) {
    %c0_i32 = arith.constant 0 : i32
    return %arg0, %arg1 : i32, i32
  }
}

module attributes {stable_mosaic.version = 11 : i64} {
  func.func @_upsample_kernel(%arg0: i32, %arg1: memref<16x4xf32, #tpu.memory_space<vmem>>, %arg2: memref<4x16xf32, #tpu.memory_space<vmem>>, %arg3: memref<1x4x4xf32, #tpu.memory_space<vmem>>, %arg4: memref<1x16x16xf32, #tpu.memory_space<vmem>>) attributes {dimension_semantics = [#tpu.dimension_semantics<parallel>], iteration_bounds = array<i64: 2>, scalar_prefetch = 0 : i64, scratch_operands = 0 : i64, tpu.core_type = #tpu.core_type<tc>, window_params = [{pipeline_mode = #tpu.pipeline_mode<synchronous>, transform_indices = @transform_0, window_bounds = array<i64: 16, 4>}, {pipeline_mode = #tpu.pipeline_mode<synchronous>, transform_indices = @transform_1, window_bounds = array<i64: 4, 16>}, {transform_indices = @transform_2, window_bounds = array<i64: 1, 4, 4>}, {transform_indices = @transform_3, window_bounds = array<i64: 1, 16, 16>}]} {
    %c0 = arith.constant 0 : index
    %c0_0 = arith.constant 0 : index
    %c0_1 = arith.constant 0 : index
    %0 = vector.load %arg3[%c0, %c0_0, %c0_1] : memref<1x4x4xf32, #tpu.memory_space<vmem>>, vector<1x4x4xf32>
    %1 = vector.shape_cast %0 : vector<1x4x4xf32> to vector<4x4xf32>
    %c0_2 = arith.constant 0 : index
    %c0_3 = arith.constant 0 : index
    %2 = vector.load %arg1[%c0_2, %c0_3] : memref<16x4xf32, #tpu.memory_space<vmem>>, vector<16x4xf32>
    %cst = arith.constant dense<0.000000e+00> : vector<16x4xf32>
    %3 = tpu.matmul %2, %1, %cst {dimension_numbers = #tpu.dot_dimension_numbers<[1], [0], [0], [1], [0, 0, 1, 1], [], []>} : vector<16x4xf32>, vector<4x4xf32>, vector<16x4xf32> -> vector<16x4xf32>
    %c0_4 = arith.constant 0 : index
    %c0_5 = arith.constant 0 : index
    %4 = vector.load %arg2[%c0_4, %c0_5] : memref<4x16xf32, #tpu.memory_space<vmem>>, vector<4x16xf32>
    %cst_6 = arith.constant dense<0.000000e+00> : vector<16x16xf32>
    %5 = tpu.matmul %3, %4, %cst_6 {dimension_numbers = #tpu.dot_dimension_numbers<[1], [0], [0], [1], [0, 0, 1, 1], [], []>} : vector<16x4xf32>, vector<4x16xf32>, vector<16x16xf32> -> vector<16x16xf32>
    %6 = vector.shape_cast %5 : vector<16x16xf32> to vector<1x16x16xf32>
    %c0_7 = arith.constant 0 : index
    %c0_8 = arith.constant 0 : index
    %c0_9 = arith.constant 0 : index
    %7 = vector.load %arg4[%c0_7, %c0_8, %c0_9] : memref<1x16x16xf32, #tpu.memory_space<vmem>>, vector<1x16x16xf32>
    tpu.vector_store %arg4[%c0_7, %c0_8, %c0_9], %6 {strides = array<i32>} : memref<1x16x16xf32, #tpu.memory_space<vmem>>, vector<1x16x16xf32>,
    return
  }
  func.func @transform_0(%arg0: i32) -> (i32, i32) {
    %c0_i32 = arith.constant 0 : i32
    %c0_i32_0 = arith.constant 0 : i32
    %c0_i32_1 = arith.constant 0 : i32
    return %c0_i32, %c0_i32_0 : i32, i32
  }
  func.func @transform_1(%arg0: i32) -> (i32, i32) {
    %c0_i32 = arith.constant 0 : i32
    %c0_i32_0 = arith.constant 0 : i32
    %c0_i32_1 = arith.constant 0 : i32
    return %c0_i32, %c0_i32_0 : i32, i32
  }
  func.func @transform_2(%arg0: i32) -> (i32, i32, i32) {
    %c0_i32 = arith.constant 0 : i32
    %c0_i32_0 = arith.constant 0 : i32
    %c0_i32_1 = arith.constant 0 : i32
    return %arg0, %c0_i32, %c0_i32_0 : i32, i32, i32
  }
  func.func @transform_3(%arg0: i32) -> (i32, i32, i32) {
    %c0_i32 = arith.constant 0 : i32
    %c0_i32_0 = arith.constant 0 : i32
    %c0_i32_1 = arith.constant 0 : i32
    return %arg0, %c0_i32, %c0_i32_0 : i32, i32, i32
  }
}

</mosaic_0001>

<bundles_post_ra>
// kernel: hrnet_is_forward.6
= control target key start
LH: loop header
LB: loop body
LE: loop exit
PB: predicated region body
PF: predicated region fallthrough
CT: control target
= control target key end

     0   :  { %s1192_s12 = smov 0   ;;  %s1194_s13 = smov 0   ;;  %s1324_s0 = inlined_call_operand.vmem [shape: bf16[512,2], index: 0, kind: input, shape index: {}]   ;;  %s1325_s1 = inlined_call_operand.vmem [shape: bf16[2,128], index: 1, kind: input, shape index: {}]   ;;  %s1326_s2 = inlined_call_operand.vmem [shape: f32[1,128], index: 2, kind: input, shape index: {}]   ;;  %s1327_s3 = inlined_call_operand.vmem [shape: bf16[512,128], index: 3, kind: output, shape index: {}]  }
   0x1   :  { %s1196_s14 = smov 0  }
   0x2 LB: > { %s25_s15 = sadd.s32 1, %s1166_s13  ;;  %p854_p0 = scmp.ge.s32.totalorder %s1170_s14, 1  ;;  %s1170_s14 = sphi %s1196_s14, %s13_s14   ;;  %s1166_s13 = sphi %s1194_s13, %s1329_s13   ;;  %s1162_s12 = sphi %s1192_s12, %s1328_s12  }
   0x3   : > { %p27_p1 = scmp.ge.s32.totalorder %s25_s15, 2  ;;  %p168_p2 = scmp.lt.s32.totalorder %s1170_s14, 3 }
   0x5   : > { %s1331_s15 = smov (%p27_p1, %s25_s15), 0  ;;  %p169_p3 = pnand %p854_p0, %p168_p2 }
   0x6   : > { %v255_v0 = vld [vmem:[%s1325_s1] sm:$0x1] (!%p169_p3)  ;;  %vm392_vm0 = vcmask (!%p169_p3), 1040384   ;;  %s855_s18 = sshll.u32 (!%p169_p3), %s1162_s12, 5  ;;  %vm343_vm1 = vcmask (!%p169_p3), 15360  }
   0x7   : > { %172 = sbr.rel (%p169_p3) target bundleno = 266 (0x10a), region = 32  ;;  %1106 = vmatprep.subr.msk.bf16.mxu0 (!%p169_p3), %vm392_vm0, %v255_v0  ;;  %1107 = vmatprep.subr.msk.bf16.mxu1 (!%p169_p3), %vm392_vm0, %v255_v0  ;;  %v394_v1 = vsel (!%p169_p3), %vm392_vm0, %v255_v0, 0  ;;  %p202_p4 = scmp.lt.s32.totalorder (!%p169_p3), %s855_s18, 63  ;;  %v1258_v18 = vld [vmem:[%s1326_s2] ss:$0 sm:$0xff] (!%p169_p3) }
   0x8   : > { %1071 = vmatpush3.bf16.msra.mxu0 (!%p169_p3), %v394_v1  ;;  %1105 = vmatpush3.bf16.msra.mxu1 (!%p169_p3), %v394_v1 }
   0xe   : > { %s1333_s18 = smov (!%p202_p4, %s855_s18), 63 }
   0xf   : > { %s856_s19 = sshll.u32 %s1333_s18, 2 }
  0x10   : > { %s1221_s22 = scalar_lea.vmem %s1324_s0, %s856_s19  ;;  %s1273_s27 = scalar_lea.vmem %s1327_s3, %s856_s19 }
  0x11   : > { %v1132_v2 = vld [vmem:[%s1221_s22] sm:$0xff]   ;;  %v1134_v4 = vld [vmem:[%s1221_s22 + $0x8] sm:$0xff]   ;;  %v1136_v6 = vld [vmem:[%s1221_s22 + $0x10] sm:$0xff]  }
  0x12   : > { %v1133_v3 = vld [vmem:[%s1221_s22 + $0x40] sm:$0xff]   ;;  %1072 = vmatprep.mubr.msk.bf16.mxu0 %vm343_vm1, %v1132_v2  ;;  %v1135_v5 = vld [vmem:[%s1221_s22 + $0x48] sm:$0xff]   ;;  %v1137_v7 = vld [vmem:[%s1221_s22 + $0x50] sm:$0xff]  }
  0x13   : > { %1088 = vmatprep.mubr.msk.bf16.mxu1 %vm343_vm1, %v1133_v3  ;;  %1073 = vmatmul.mubr.msk.bf16.vlgmr.msra.gmra.mrb[0].mxu0 %vm343_vm1, %v1134_v4  ;;  %v1138_v8 = vld [vmem:[%s1221_s22 + $0x18] sm:$0xff]   ;;  %v1140_v10 = vld [vmem:[%s1221_s22 + $0x20] sm:$0xff]   ;;  %v1142_v12 = vld [vmem:[%s1221_s22 + $0x28] sm:$0xff]  }
  0x14   : > { %1089 = vmatmul.mubr.msk.bf16.vlgmr.msra.gmra.mrb[0].mxu1 %vm343_vm1, %v1135_v5  ;;  %1076 = vmatprep.mubr.msk.bf16.mxu0 %vm343_vm1, %v1136_v6  ;;  %v1139_v9 = vld [vmem:[%s1221_s22 + $0x58] sm:$0xff]   ;;  %v1141_v11 = vld [vmem:[%s1221_s22 + $0x60] sm:$0xff]   ;;  %v1143_v13 = vld [vmem:[%s1221_s22 + $0x68] sm:$0xff]  }
  0x15   : > { %1092 = vmatprep.mubr.msk.bf16.mxu1 %vm343_vm1, %v1137_v7  ;;  %v1144_v14 = vld [vmem:[%s1221_s22 + $0x30] sm:$0xff]   ;;  %v1146_v16 = vld [vmem:[%s1221_s22 + $0x38] sm:$0xff]  }
  0x16   : > { %v1145_v15 = vld [vmem:[%s1221_s22 + $0x70] sm:$0xff]   ;;  %v1147_v17 = vld [vmem:[%s1221_s22 + $0x78] sm:$0xff]  }
  0x1b   : > { %1077 = vmatmul.mubr.msk.bf16.gmra.mrb[4].mxu0 %vm343_vm1, %v1138_v8 }
  0x1c   : > { %1093 = vmatmul.mubr.msk.bf16.gmra.mrb[4].mxu1 %vm343_vm1, %v1139_v9  ;;  %1080 = vmatprep.mubr.msk.bf16.mxu0 %vm343_vm1, %v1140_v10 }
  0x1d   : > { %1096 = vmatprep.mubr.msk.bf16.mxu1 %vm343_vm1, %v1141_v11 }
  0x23   : > { %1081 = vmatmul.mubr.msk.bf16.gmra.mrb[8].mxu0 %vm343_vm1, %v1142_v12 }
  0x24   : > { %1097 = vmatmul.mubr.msk.bf16.gmra.mrb[8].mxu1 %vm343_vm1, %v1143_v13  ;;  %1084 = vmatprep.mubr.msk.bf16.mxu0 %vm343_vm1, %v1144_v14 }
  0x25   : > { %1100 = vmatprep.mubr.msk.bf16.mxu1 %vm343_vm1, %v1145_v15 }
  0x2b   : > { %1085 = vmatmul.mubr.msk.bf16.gmra.mrb[12].mxu0 %vm343_vm1, %v1146_v16 }
  0x2c   : > { %1101 = vmatmul.mubr.msk.bf16.gmra.mrb[12].mxu1 %vm343_vm1, %v1147_v17 }
  0xe6   : > { %v1074_v19 = vpop.f32.mrb[0].mxu0 }
  0xe7   : > { %v439_v20 = vadd.f32 %v1074_v19, %v1258_v18  ;;  %v1090_v21 = vpop.f32.mrb[0].mxu1  ;;  %v430_v22 = vpop.f32.mrb[1].mxu0 }
  0xe8   : > { %v503_v23 = vadd.f32 %v1090_v21, %v1258_v18  ;;  %v431_v24 = vadd.f32 %v1258_v18, %v430_v22  ;;  %v494_v25 = vpop.f32.mrb[1].mxu1  ;;  %v1075_v26 = vpop.f32.mrb[2].mxu0 }
  0xe9   : > { %v495_v27 = vadd.f32 %v1258_v18, %v494_v25  ;;  %v442_v28 = vadd.f32 %v1075_v26, %v1258_v18  ;;  %v1091_v29 = vpop.f32.mrb[2].mxu1  ;;  %v433_v30 = vpop.f32.mrb[3].mxu0  ;;  %v559_v34 = vmax.f32 %v439_v20, 0.0 }
  0xea   : > { %v506_v31 = vadd.f32 %v1091_v29, %v1258_v18  ;;  %v434_v32 = vadd.f32 %v1258_v18, %v433_v30  ;;  %v497_v33 = vpop.f32.mrb[3].mxu1  ;;  %v575_v37 = vmax.f32 %v503_v23, 0.0  ;;  %v557_v38 = vmax.f32 %v431_v24, 0.0 }
  0xeb   : > { %v560_v35 = vmax.f32 %v442_v28, 0.0  ;;  %v498_v36 = vadd.f32 %v1258_v18, %v497_v33  ;;  %v573_v41 = vmax.f32 %v495_v27, 0.0 }
  0xec   : > { %v576_v39 = vmax.f32 %v506_v31, 0.0  ;;  %v558_v40 = vmax.f32 %v434_v32, 0.0 }
  0xed   : > { %v966_v42 = vpack.c.bf16 %v560_v35, %v559_v34  ;;  %v574_v43 = vmax.f32 %v498_v36, 0.0 }
  0xee   : > { %v1006_v44 = vpack.c.bf16 %v576_v39, %v575_v37  ;;  %v961_v45 = vpack.c.bf16 %v558_v40, %v557_v38  ;;  %v1078_v46 = vpop.f32.mrb[4].mxu0 }
  0xef   : > { %1038 = vst [vmem:[%s1273_s27 + $0x8] sm:$0xff] %v966_v42   ;;  %v1001_v47 = vpack.c.bf16 %v574_v43, %v573_v41  ;;  %v455_v48 = vadd.f32 %v1078_v46, %v1258_v18  ;;  %v1094_v49 = vpop.f32.mrb[4].mxu1  ;;  %v446_v50 = vpop.f32.mrb[5].mxu0 }
  0xf0   : > { %1046 = vst [vmem:[%s1273_s27 + $0x48] sm:$0xff] %v1006_v44   ;;  %962 = vst [vmem:[%s1273_s27] sm:$0xff] %v961_v45   ;;  %v519_v51 = vadd.f32 %v1094_v49, %v1258_v18  ;;  %v447_v52 = vadd.f32 %v1258_v18, %v446_v50  ;;  %v510_v53 = vpop.f32.mrb[5].mxu1  ;;  %v1079_v54 = vpop.f32.mrb[6].mxu0 }
  0xf1   : > { %1045 = vst [vmem:[%s1273_s27 + $0x40] sm:$0xff] %v1001_v47   ;;  %v511_v55 = vadd.f32 %v1258_v18, %v510_v53  ;;  %v458_v56 = vadd.f32 %v1079_v54, %v1258_v18  ;;  %v1095_v57 = vpop.f32.mrb[6].mxu1  ;;  %v449_v58 = vpop.f32.mrb[7].mxu0  ;;  %v563_v62 = vmax.f32 %v455_v48, 0.0 }
  0xf2   : > { %v522_v59 = vadd.f32 %v1095_v57, %v1258_v18  ;;  %v450_v60 = vadd.f32 %v1258_v18, %v449_v58  ;;  %v513_v61 = vpop.f32.mrb[7].mxu1  ;;  %v579_v1 = vmax.f32 %v519_v51, 0.0  ;;  %v561_v2 = vmax.f32 %v447_v52, 0.0 }
  0xf3   : > { %v564_v63 = vmax.f32 %v458_v56, 0.0  ;;  %v514_v0 = vadd.f32 %v1258_v18, %v513_v61  ;;  %v577_v5 = vmax.f32 %v511_v55, 0.0 }
  0xf4   : > { %v580_v3 = vmax.f32 %v522_v59, 0.0  ;;  %v562_v4 = vmax.f32 %v450_v60, 0.0 }
  0xf5   : > { %v976_v6 = vpack.c.bf16 %v564_v63, %v563_v62  ;;  %v578_v7 = vmax.f32 %v514_v0, 0.0 }
  0xf6   : > { %v1016_v8 = vpack.c.bf16 %v580_v3, %v579_v1  ;;  %v971_v9 = vpack.c.bf16 %v562_v4, %v561_v2  ;;  %v1082_v10 = vpop.f32.mrb[8].mxu0 }
  0xf7   : > { %1040 = vst [vmem:[%s1273_s27 + $0x18] sm:$0xff] %v976_v6   ;;  %v1011_v11 = vpack.c.bf16 %v578_v7, %v577_v5  ;;  %v471_v12 = vadd.f32 %v1082_v10, %v1258_v18  ;;  %v1098_v13 = vpop.f32.mrb[8].mxu1  ;;  %v462_v14 = vpop.f32.mrb[9].mxu0 }
  0xf8   : > { %1048 = vst [vmem:[%s1273_s27 + $0x58] sm:$0xff] %v1016_v8   ;;  %1039 = vst [vmem:[%s1273_s27 + $0x10] sm:$0xff] %v971_v9   ;;  %v535_v15 = vadd.f32 %v1098_v13, %v1258_v18  ;;  %v463_v16 = vadd.f32 %v1258_v18, %v462_v14  ;;  %v526_v17 = vpop.f32.mrb[9].mxu1  ;;  %v1083_v19 = vpop.f32.mrb[10].mxu0 }
  0xf9   : > { %1047 = vst [vmem:[%s1273_s27 + $0x50] sm:$0xff] %v1011_v11   ;;  %v527_v20 = vadd.f32 %v1258_v18, %v526_v17  ;;  %v474_v21 = vadd.f32 %v1083_v19, %v1258_v18  ;;  %v1099_v22 = vpop.f32.mrb[10].mxu1  ;;  %v465_v23 = vpop.f32.mrb[11].mxu0  ;;  %v567_v27 = vmax.f32 %v471_v12, 0.0 }
  0xfa   : > { %v538_v24 = vadd.f32 %v1099_v22, %v1258_v18  ;;  %v466_v25 = vadd.f32 %v1258_v18, %v465_v23  ;;  %v529_v26 = vpop.f32.mrb[11].mxu1  ;;  %v583_v30 = vmax.f32 %v535_v15, 0.0  ;;  %v565_v31 = vmax.f32 %v463_v16, 0.0 }
  0xfb   : > { %v568_v28 = vmax.f32 %v474_v21, 0.0  ;;  %v530_v29 = vadd.f32 %v1258_v18, %v529_v26  ;;  %v581_v34 = vmax.f32 %v527_v20, 0.0 }
  0xfc   : > { %v584_v32 = vmax.f32 %v538_v24, 0.0  ;;  %v566_v33 = vmax.f32 %v466_v25, 0.0 }
  0xfd   : > { %v986_v35 = vpack.c.bf16 %v568_v28, %v567_v27  ;;  %v582_v36 = vmax.f32 %v530_v29, 0.0 }
  0xfe   : > { %v1026_v37 = vpack.c.bf16 %v584_v32, %v583_v30  ;;  %v981_v38 = vpack.c.bf16 %v566_v33, %v565_v31  ;;  %v1086_v39 = vpop.f32.mrb[12].mxu0 }
  0xff   : > { %1042 = vst [vmem:[%s1273_s27 + $0x28] sm:$0xff] %v986_v35   ;;  %v1021_v40 = vpack.c.bf16 %v582_v36, %v581_v34  ;;  %v487_v41 = vadd.f32 %v1086_v39, %v1258_v18  ;;  %v1102_v42 = vpop.f32.mrb[12].mxu1  ;;  %v478_v43 = vpop.f32.mrb[13].mxu0 }
 0x100   : > { %1050 = vst [vmem:[%s1273_s27 + $0x68] sm:$0xff] %v1026_v37   ;;  %1041 = vst [vmem:[%s1273_s27 + $0x20] sm:$0xff] %v981_v38   ;;  %v551_v44 = vadd.f32 %v1102_v42, %v1258_v18  ;;  %v479_v45 = vadd.f32 %v1258_v18, %v478_v43  ;;  %v542_v46 = vpop.f32.mrb[13].mxu1  ;;  %v1087_v47 = vpop.f32.mrb[14].mxu0 }
 0x101   : > { %1049 = vst [vmem:[%s1273_s27 + $0x60] sm:$0xff] %v1021_v40   ;;  %v543_v48 = vadd.f32 %v1258_v18, %v542_v46  ;;  %v490_v49 = vadd.f32 %v1087_v47, %v1258_v18  ;;  %v1103_v50 = vpop.f32.mrb[14].mxu1  ;;  %v481_v51 = vpop.f32.mrb[15].mxu0  ;;  %v571_v55 = vmax.f32 %v487_v41, 0.0 }
 0x102   : > { %v554_v52 = vadd.f32 %v1103_v50, %v1258_v18  ;;  %v482_v53 = vadd.f32 %v1258_v18, %v481_v51  ;;  %v545_v54 = vpop.f32.mrb[15].mxu1  ;;  %v587_v58 = vmax.f32 %v551_v44, 0.0  ;;  %v569_v59 = vmax.f32 %v479_v45, 0.0 }
 0x103   : > { %v572_v56 = vmax.f32 %v490_v49, 0.0  ;;  %v546_v57 = vadd.f32 %v1258_v18, %v545_v54  ;;  %v585_v62 = vmax.f32 %v543_v48, 0.0 }
 0x104   : > { %v588_v60 = vmax.f32 %v554_v52, 0.0  ;;  %v570_v61 = vmax.f32 %v482_v53, 0.0 }
 0x105   : > { %v996_v63 = vpack.c.bf16 %v572_v56, %v571_v55  ;;  %v586_v0 = vmax.f32 %v546_v57, 0.0 }
 0x106   : > { %v1036_v1 = vpack.c.bf16 %v588_v60, %v587_v58  ;;  %v991_v2 = vpack.c.bf16 %v570_v61, %v569_v59 }
 0x107   : > { %1044 = vst [vmem:[%s1273_s27 + $0x38] sm:$0xff] %v996_v63   ;;  %v1031_v3 = vpack.c.bf16 %v586_v0, %v585_v62 }
 0x108   : > { %1052 = vst [vmem:[%s1273_s27 + $0x78] sm:$0xff] %v1036_v1   ;;  %1043 = vst [vmem:[%s1273_s27 + $0x30] sm:$0xff] %v991_v2  }
 0x109   : > { %1051 = vst [vmem:[%s1273_s27 + $0x70] sm:$0xff] %v1031_v3  }
 0x10a PF: > { %s13_s14 = sadd.s32 1, %s1170_s14   ;;  %s1328_s12 = smov %s1166_s13 }
 0x10b   : > { %p10_p5 = scmp.ge.s32.totalorder %s13_s14, 4   ;;  %s1329_s13 = smov %s1331_s15 }
 0x10d   :  { %12 = sbr.rel (!%p10_p5) target bundleno = 2 (0x2), region = 68 }

// kernel: hrnet_is_forward.7
= control target key start
LH: loop header
LB: loop body
LE: loop exit
PB: predicated region body
PF: predicated region fallthrough
CT: control target
= control target key end

     0   :  { %v553_v0 = vmov 0   ;;  %vm182_vm0 = vcmask 130048   ;;  %s684_s1 = inlined_call_operand.vmem [shape: bf16[144,128], index: 1, kind: input, shape index: {}]   ;;  %s685_s0 = inlined_call_operand.vmem [shape: bf16[128,144], index: 0, kind: input, shape index: {}]   ;;  %s686_s2 = inlined_call_operand.vmem [shape: f32[1,128], index: 2, kind: input, shape index: {}]   ;;  %s687_s3 = inlined_call_operand.vmem [shape: bf16[128,128], index: 3, kind: output, shape index: {}]  }
   0x1   :  { %207 = vmatprep.subr.bf16.mxu0 %v553_v0  ;;  %501 = vmatprep.subr.bf16.mxu1 %v553_v0  ;;  %v520_v1 = vld [vmem:[%s684_s1] sm:$0xff]   ;;  %v521_v2 = vld [vmem:[%s684_s1 + $0x8] sm:$0xff]   ;;  %v522_v3 = vld [vmem:[%s684_s1 + $0x10] sm:$0xff]  }
   0x2   :  { %208 = vmatpush1.bf16.msra.mxu0 %v520_v1  ;;  %510 = vmatpush1.bf16.msra.mxu1 %v520_v1  ;;  %v523_v4 = vld [vmem:[%s684_s1 + $0x18] sm:$0xff]   ;;  %v531_v5 = vld [vmem:[%s685_s0 + $0x4] ss:$8 sps:$4 sm:$0xff]   ;;  %v526_v9 = vld [vmem:[%s684_s1 + $0x30] sm:$0xff]  }
   0x3   :  { %209 = vmatprep.subr.bf16.mxu0 %v553_v0  ;;  %502 = vmatprep.subr.bf16.mxu1 %v553_v0  ;;  %v534_v6 = vld [vmem:[%s685_s0 + $0x44] ss:$8 sps:$4 sm:$0xff]   ;;  %v527_v10 = vld [vmem:[%s684_s1 + $0x38] sm:$0xff]   ;;  %v529_v12 = vld [vmem:[%s685_s0] ss:$8 sps:$4 sm:$0xff]  }
   0x4   :  { %414 = vmatprep.mubr.msk.bf16.mxu0 %vm182_vm0, %v531_v5  ;;  %418 = vmatprep.mubr.msk.bf16.mxu1 %vm182_vm0, %v534_v6  ;;  %v524_v7 = vld [vmem:[%s684_s1 + $0x20] sm:$0xff]   ;;  %v525_v8 = vld [vmem:[%s684_s1 + $0x28] sm:$0xff]   ;;  %v535_v14 = vld [vmem:[%s685_s0 + $0x14] ss:$8 sps:$4 sm:$0xff]  }
   0x5   :  { %v528_v11 = vld [vmem:[%s684_s1 + $0x40] sm:$0xff]   ;;  %v537_v15 = vld [vmem:[%s685_s0 + $0x54] ss:$8 sps:$4 sm:$0xff]   ;;  %v539_v16 = vld [vmem:[%s685_s0 + $0x10] ss:$8 sps:$4 sm:$0xff]  }
   0x6   :  { %210 = vmatpush1.bf16.msra.mxu0 %v521_v2  ;;  %511 = vmatpush1.bf16.msra.mxu1 %v521_v2  ;;  %v532_v13 = vld [vmem:[%s685_s0 + $0x40] ss:$8 sps:$4 sm:$0xff]   ;;  %v540_v17 = vld [vmem:[%s685_s0 + $0x50] ss:$8 sps:$4 sm:$0xff]   ;;  %v541_v18 = vld [vmem:[%s685_s0 + $0x24] ss:$8 sps:$4 sm:$0xff]  }
   0x7   :  { %211 = vmatprep.subr.bf16.mxu0 %v553_v0  ;;  %503 = vmatprep.subr.bf16.mxu1 %v553_v0  ;;  %v543_v19 = vld [vmem:[%s685_s0 + $0x64] ss:$8 sps:$4 sm:$0xff]   ;;  %v545_v20 = vld [vmem:[%s685_s0 + $0x20] ss:$8 sps:$4 sm:$0xff]   ;;  %v547_v22 = vld [vmem:[%s685_s0 + $0x34] ss:$8 sps:$4 sm:$0xff]  }
   0x8   :  { %v546_v21 = vld [vmem:[%s685_s0 + $0x60] ss:$8 sps:$4 sm:$0xff]   ;;  %v549_v23 = vld [vmem:[%s685_s0 + $0x74] ss:$8 sps:$4 sm:$0xff]   ;;  %v551_v24 = vld [vmem:[%s685_s0 + $0x30] ss:$8 sps:$4 sm:$0xff]  }
   0x9   :  { %v552_v25 = vld [vmem:[%s685_s0 + $0x70] ss:$8 sps:$4 sm:$0xff]   ;;  %v388_v26 = vld [vmem:[%s686_s2] ss:$0 sm:$0xff] }
   0xa   :  { %212 = vmatpush1.bf16.msra.mxu0 %v522_v3  ;;  %512 = vmatpush1.bf16.msra.mxu1 %v522_v3 }
   0xb   :  { %213 = vmatprep.subr.bf16.mxu0 %v553_v0  ;;  %504 = vmatprep.subr.bf16.mxu1 %v553_v0 }
   0xe   :  { %214 = vmatpush1.bf16.msra.mxu0 %v523_v4  ;;  %513 = vmatpush1.bf16.msra.mxu1 %v523_v4 }
   0xf   :  { %215 = vmatprep.subr.bf16.mxu0 %v553_v0  ;;  %505 = vmatprep.subr.bf16.mxu1 %v553_v0 }
  0x12   :  { %216 = vmatpush1.bf16.msra.mxu0 %v524_v7  ;;  %514 = vmatpush1.bf16.msra.mxu1 %v524_v7 }
  0x13   :  { %217 = vmatprep.subr.bf16.mxu0 %v553_v0  ;;  %506 = vmatprep.subr.bf16.mxu1 %v553_v0 }
  0x16   :  { %218 = vmatpush1.bf16.msra.mxu0 %v525_v8  ;;  %515 = vmatpush1.bf16.msra.mxu1 %v525_v8 }
  0x17   :  { %219 = vmatprep.subr.bf16.mxu0 %v553_v0  ;;  %507 = vmatprep.subr.bf16.mxu1 %v553_v0 }
  0x1a   :  { %220 = vmatpush1.bf16.msra.mxu0 %v526_v9  ;;  %516 = vmatpush1.bf16.msra.mxu1 %v526_v9 }
  0x1b   :  { %221 = vmatprep.subr.bf16.mxu0 %v553_v0  ;;  %508 = vmatprep.subr.bf16.mxu1 %v553_v0 }
  0x1e   :  { %222 = vmatpush1.bf16.msra.mxu0 %v527_v10  ;;  %517 = vmatpush1.bf16.msra.mxu1 %v527_v10 }
  0x1f   :  { %223 = vmatprep.subr.bf16.mxu0 %v553_v0  ;;  %509 = vmatprep.subr.bf16.mxu1 %v553_v0 }
  0x22   :  { %224 = vmatpush1.bf16.msra.mxu0 %v528_v11  ;;  %518 = vmatpush1.bf16.msra.mxu1 %v528_v11 }
  0x25   :  { %240 = vmatmul.mubr.bf16.vlgmr.msra.gmra.mrb[0].mxu0 %v529_v12  ;;  %272 = vmatmul.mubr.bf16.vlgmr.msra.gmra.mrb[0].mxu1 %v532_v13 }
  0x26   :  { %415 = vmatprep.mubr.msk.bf16.mxu0 %vm182_vm0, %v535_v14  ;;  %419 = vmatprep.mubr.msk.bf16.mxu1 %vm182_vm0, %v537_v15 }
  0x2d   :  { %248 = vmatmul.mubr.bf16.gmra.mrb[4].mxu0 %v539_v16  ;;  %280 = vmatmul.mubr.bf16.gmra.mrb[4].mxu1 %v540_v17 }
  0x2e   :  { %416 = vmatprep.mubr.msk.bf16.mxu0 %vm182_vm0, %v541_v18  ;;  %420 = vmatprep.mubr.msk.bf16.mxu1 %vm182_vm0, %v543_v19 }
  0x35   :  { %256 = vmatmul.mubr.bf16.gmra.mrb[8].mxu0 %v545_v20  ;;  %288 = vmatmul.mubr.bf16.gmra.mrb[8].mxu1 %v546_v21 }
  0x36   :  { %417 = vmatprep.mubr.msk.bf16.mxu0 %vm182_vm0, %v547_v22  ;;  %421 = vmatprep.mubr.msk.bf16.mxu1 %vm182_vm0, %v549_v23 }
  0x3d   :  { %264 = vmatmul.mubr.bf16.gmra.mrb[12].mxu0 %v551_v24  ;;  %296 = vmatmul.mubr.bf16.gmra.mrb[12].mxu1 %v552_v25 }
  0xf8   :  { %v241_v27 = vpop.f32.mrb[0].mxu0  ;;  %v273_v28 = vpop.f32.mrb[0].mxu1 }
  0xf9   :  { %v243_v29 = vpop.f32.mrb[1].mxu0  ;;  %v275_v30 = vpop.f32.mrb[1].mxu1  ;;  %v242_v33 = vadd.f32 %v388_v26, %v241_v27  ;;  %v274_v34 = vadd.f32 %v388_v26, %v273_v28 }
  0xfa   :  { %v244_v31 = vpop.f32.mrb[2].mxu0  ;;  %v276_v32 = vpop.f32.mrb[2].mxu1 }
  0xfb   :  { %v245_v35 = vadd.f32 %v388_v26, %v244_v31  ;;  %v277_v36 = vadd.f32 %v388_v26, %v276_v32  ;;  %v246_v37 = vpop.f32.mrb[3].mxu0  ;;  %v278_v38 = vpop.f32.mrb[3].mxu1 }
  0xfd   :  { %v457_v39 = vpack.c.bf16 %v245_v35, %v242_v33  ;;  %v477_v40 = vpack.c.bf16 %v277_v36, %v274_v34 }
  0xff   :  { %458 = vst [vmem:[%s687_s3] sm:$0xff] %v457_v39   ;;  %497 = vst [vmem:[%s687_s3 + $0x20] sm:$0xff] %v477_v40  }
 0x100   :  { %v249_v41 = vpop.f32.mrb[4].mxu0  ;;  %v281_v42 = vpop.f32.mrb[4].mxu1 }
 0x101   :  { %v251_v43 = vpop.f32.mrb[5].mxu0  ;;  %v283_v44 = vpop.f32.mrb[5].mxu1  ;;  %v250_v47 = vadd.f32 %v388_v26, %v249_v41  ;;  %v282_v48 = vadd.f32 %v388_v26, %v281_v42 }
 0x102   :  { %v252_v45 = vpop.f32.mrb[6].mxu0  ;;  %v284_v46 = vpop.f32.mrb[6].mxu1 }
 0x103   :  { %v253_v49 = vadd.f32 %v388_v26, %v252_v45  ;;  %v285_v50 = vadd.f32 %v388_v26, %v284_v46  ;;  %v254_v51 = vpop.f32.mrb[7].mxu0  ;;  %v286_v52 = vpop.f32.mrb[7].mxu1 }
 0x105   :  { %v462_v53 = vpack.c.bf16 %v253_v49, %v250_v47  ;;  %v482_v54 = vpack.c.bf16 %v285_v50, %v282_v48 }
 0x107   :  { %494 = vst [vmem:[%s687_s3 + $0x8] sm:$0xff] %v462_v53   ;;  %498 = vst [vmem:[%s687_s3 + $0x28] sm:$0xff] %v482_v54  }
 0x108   :  { %v257_v55 = vpop.f32.mrb[8].mxu0  ;;  %v289_v56 = vpop.f32.mrb[8].mxu1 }
 0x109   :  { %v259_v57 = vpop.f32.mrb[9].mxu0  ;;  %v291_v58 = vpop.f32.mrb[9].mxu1  ;;  %v258_v61 = vadd.f32 %v388_v26, %v257_v55  ;;  %v290_v62 = vadd.f32 %v388_v26, %v289_v56 }
 0x10a   :  { %v260_v59 = vpop.f32.mrb[10].mxu0  ;;  %v292_v60 = vpop.f32.mrb[10].mxu1 }
 0x10b   :  { %v261_v63 = vadd.f32 %v388_v26, %v260_v59  ;;  %v293_v0 = vadd.f32 %v388_v26, %v292_v60  ;;  %v262_v1 = vpop.f32.mrb[11].mxu0  ;;  %v294_v2 = vpop.f32.mrb[11].mxu1 }
 0x10d   :  { %v467_v3 = vpack.c.bf16 %v261_v63, %v258_v61  ;;  %v487_v4 = vpack.c.bf16 %v293_v0, %v290_v62 }
 0x10f   :  { %495 = vst [vmem:[%s687_s3 + $0x10] sm:$0xff] %v467_v3   ;;  %499 = vst [vmem:[%s687_s3 + $0x30] sm:$0xff] %v487_v4  }
 0x110   :  { %v265_v5 = vpop.f32.mrb[12].mxu0  ;;  %v297_v6 = vpop.f32.mrb[12].mxu1 }
 0x111   :  { %v267_v7 = vpop.f32.mrb[13].mxu0  ;;  %v299_v8 = vpop.f32.mrb[13].mxu1  ;;  %v266_v11 = vadd.f32 %v388_v26, %v265_v5  ;;  %v298_v12 = vadd.f32 %v388_v26, %v297_v6 }
 0x112   :  { %v268_v9 = vpop.f32.mrb[14].mxu0  ;;  %v300_v10 = vpop.f32.mrb[14].mxu1 }
 0x113   :  { %v269_v13 = vadd.f32 %v388_v26, %v268_v9  ;;  %v301_v14 = vadd.f32 %v388_v26, %v300_v10  ;;  %v270_v15 = vpop.f32.mrb[15].mxu0  ;;  %v302_v16 = vpop.f32.mrb[15].mxu1 }
 0x115   :  { %v472_v17 = vpack.c.bf16 %v269_v13, %v266_v11  ;;  %v492_v18 = vpack.c.bf16 %v301_v14, %v298_v12 }
 0x117   :  { %496 = vst [vmem:[%s687_s3 + $0x18] sm:$0xff] %v472_v17   ;;  %500 = vst [vmem:[%s687_s3 + $0x38] sm:$0xff] %v492_v18  }

// kernel: hrnet_is_forward.8
= control target key start
LH: loop header
LB: loop body
LE: loop exit
PB: predicated region body
PF: predicated region fallthrough
CT: control target
= control target key end

     0   :  { %vm121_vm0 = vcmask 1044480   ;;  %vm122_vm1 = vcmask 1045504   ;;  %vm96_vm2 = vcmask 220160   ;;  %v555_v1 = vmov 65535   ;;  %s704_s1 = inlined_call_operand.vmem [shape: bf16[27,128], index: 1, kind: input, shape index: {}]   ;;  %s705_s0 = inlined_call_operand.vmem [shape: bf16[128,27], index: 0, kind: input, shape index: {}]   ;;  %s706_s3 = inlined_call_operand.vmem [shape: bf16[128,128], index: 3, kind: input, shape index: {}]   ;;  %s707_s2 = inlined_call_operand.vmem [shape: f32[1,128], index: 2, kind: input, shape index: {}]   ;;  %s708_s4 = inlined_call_operand.vmem [shape: bf16[128,128], index: 4, kind: output, shape index: {}]  }
   0x1   :  { %v545_v0 = vld [vmem:[%s704_s1] sm:$0xff]   ;;  %v123_v2 = vsel %vm121_vm0, 4294967295, %v555_v1  ;;  %v546_v3 = vld [vmem:[%s704_s1 + $0x8] sm:$0x3f]   ;;  %v551_v10 = vld [vmem:[%s705_s0 + $0x10] sm:$0xff]  }
   0x2   :  { %520 = vmatprep.subr.bf16.mxu0 %v545_v0  ;;  %540 = vmatprep.subr.bf16.mxu1 %v545_v0  ;;  %v124_v4 = vsel %vm122_vm1, %v123_v2, 0  ;;  %v547_v5 = vld [vmem:[%s705_s0] sm:$0xff]   ;;  %v549_v8 = vld [vmem:[%s705_s0 + $0x8] sm:$0xff]   ;;  %v552_v11 = vld [vmem:[%s705_s0 + $0x30] sm:$0xff]  }
   0x3   :  { %521 = vmatpush3.bf16.msra.mxu0 %v545_v0  ;;  %542 = vmatpush3.bf16.msra.mxu1 %v545_v0  ;;  %v126_v6 = vand.u32 %v546_v3, %v124_v4  ;;  %v548_v7 = vld [vmem:[%s705_s0 + $0x20] sm:$0xff]   ;;  %v550_v9 = vld [vmem:[%s705_s0 + $0x28] sm:$0xff]   ;;  %v553_v12 = vld [vmem:[%s705_s0 + $0x18] sm:$0xff]  }
   0x4   :  { %524 = vmatprep.mubr.msk.bf16.mxu0 %vm96_vm2, %v547_v5  ;;  %532 = vmatprep.mubr.msk.bf16.mxu1 %vm96_vm2, %v548_v7  ;;  %v554_v13 = vld [vmem:[%s705_s0 + $0x38] sm:$0xff]   ;;  %v496_v14 = vld [vmem:[%s706_s3 + $0x8] sm:$0xff]   ;;  %v425_v16 = vld [vmem:[%s706_s3] sm:$0xff]  }
   0x5   :  { %522 = vmatprep.subr.bf16.mxu0 %v126_v6  ;;  %541 = vmatprep.subr.bf16.mxu1 %v126_v6  ;;  %v500_v15 = vld [vmem:[%s706_s3 + $0x28] sm:$0xff]   ;;  %v499_v17 = vld [vmem:[%s706_s3 + $0x20] sm:$0xff]   ;;  %v639_v19 = vld [vmem:[%s706_s3 + $0x18] sm:$0xff]   ;;  %v430_v21 = vunpack.c.l.bf16 %v496_v14  ;;  %v426_v23 = vunpack.c.l.bf16 %v425_v16  ;;  %v431_v29 = vunpack.c.h.bf16 %v496_v14  ;;  %v427_v31 = vunpack.c.h.bf16 %v425_v16 }
   0x6   :  { %v634_v18 = vld [vmem:[%s707_s2] ss:$0 sm:$0xff]  ;;  %v644_v20 = vld [vmem:[%s706_s3 + $0x38] sm:$0xff]   ;;  %v446_v22 = vunpack.c.l.bf16 %v500_v15  ;;  %v442_v24 = vunpack.c.l.bf16 %v499_v17  ;;  %v649_v25 = vld [vmem:[%s706_s3 + $0x10] sm:$0xff]   ;;  %v447_v30 = vunpack.c.h.bf16 %v500_v15  ;;  %v443_v32 = vunpack.c.h.bf16 %v499_v17 }
   0x7   :  { %523 = vmatpush3.bf16.msra.mxu0 %v126_v6  ;;  %543 = vmatpush3.bf16.msra.mxu1 %v126_v6  ;;  %v654_v26 = vld [vmem:[%s706_s3 + $0x30] sm:$0xff]   ;;  %v438_v37 = vunpack.c.l.bf16 %v639_v19  ;;  %v454_v38 = vunpack.c.l.bf16 %v644_v20  ;;  %v434_v43 = vunpack.c.l.bf16 %v649_v25  ;;  %v439_v57 = vunpack.c.h.bf16 %v639_v19 }
   0x8   :  { %v450_v44 = vunpack.c.l.bf16 %v654_v26  ;;  %v455_v58 = vunpack.c.h.bf16 %v644_v20  ;;  %v435_v61 = vunpack.c.h.bf16 %v649_v25  ;;  %v451_v62 = vunpack.c.h.bf16 %v654_v26 }
   0xa   :  { %525 = vmatmul.mubr.msk.bf16.vlgmr.msra.gmra.mrb[0].mxu0 %vm96_vm2, %v549_v8  ;;  %533 = vmatmul.mubr.msk.bf16.vlgmr.msra.gmra.mrb[0].mxu1 %vm96_vm2, %v550_v9 }
   0xb   :  { %528 = vmatprep.mubr.msk.bf16.mxu0 %vm96_vm2, %v551_v10  ;;  %536 = vmatprep.mubr.msk.bf16.mxu1 %vm96_vm2, %v552_v11 }
  0x12   :  { %529 = vmatmul.mubr.msk.bf16.gmra.mrb[4].mxu0 %vm96_vm2, %v553_v12  ;;  %537 = vmatmul.mubr.msk.bf16.gmra.mrb[4].mxu1 %vm96_vm2, %v554_v13 }
  0xdd   :  { %v526_v27 = vpop.f32.mrb[0].mxu0  ;;  %v534_v28 = vpop.f32.mrb[0].mxu1 }
  0xde   :  { %v171_v33 = vadd.f32 %v526_v27, %v634_v18  ;;  %v203_v34 = vadd.f32 %v534_v28, %v634_v18  ;;  %v162_v35 = vpop.f32.mrb[1].mxu0  ;;  %v194_v36 = vpop.f32.mrb[1].mxu1 }
  0xdf   :  { %v163_v39 = vadd.f32 %v634_v18, %v162_v35  ;;  %v195_v40 = vadd.f32 %v634_v18, %v194_v36  ;;  %v527_v41 = vpop.f32.mrb[2].mxu0  ;;  %v535_v42 = vpop.f32.mrb[2].mxu1 }
  0xe0   :  { %v259_v45 = vadd.f32 %v430_v21, %v171_v33  ;;  %v267_v46 = vadd.f32 %v446_v22, %v203_v34  ;;  %v174_v47 = vadd.f32 %v527_v41, %v634_v18  ;;  %v206_v48 = vadd.f32 %v535_v42, %v634_v18  ;;  %v165_v49 = vpop.f32.mrb[3].mxu0  ;;  %v197_v50 = vpop.f32.mrb[3].mxu1 }
  0xe1   :  { %v257_v51 = vadd.f32 %v426_v23, %v163_v39  ;;  %v265_v52 = vadd.f32 %v442_v24, %v195_v40  ;;  %v166_v53 = vadd.f32 %v634_v18, %v165_v49  ;;  %v198_v54 = vadd.f32 %v634_v18, %v197_v50 }
  0xe2   :  { %v260_v55 = vadd.f32 %v431_v29, %v174_v47  ;;  %v268_v56 = vadd.f32 %v447_v30, %v206_v48  ;;  %v275_v63 = vmax.f32 %v259_v45, 0.0  ;;  %v283_v0 = vmax.f32 %v267_v46, 0.0 }
  0xe3   :  { %v258_v59 = vadd.f32 %v427_v31, %v166_v53  ;;  %v266_v60 = vadd.f32 %v443_v32, %v198_v54  ;;  %v273_v3 = vmax.f32 %v257_v51, 0.0  ;;  %v281_v4 = vmax.f32 %v265_v52, 0.0 }
  0xe4   :  { %v276_v1 = vmax.f32 %v260_v55, 0.0  ;;  %v284_v2 = vmax.f32 %v268_v56, 0.0 }
  0xe5   :  { %v274_v5 = vmax.f32 %v258_v59, 0.0  ;;  %v282_v6 = vmax.f32 %v266_v60, 0.0  ;;  %v530_v7 = vpop.f32.mrb[4].mxu0  ;;  %v538_v8 = vpop.f32.mrb[4].mxu1 }
  0xe6   :  { %v464_v9 = vpack.c.bf16 %v276_v1, %v275_v63  ;;  %v484_v10 = vpack.c.bf16 %v284_v2, %v283_v0  ;;  %v187_v11 = vadd.f32 %v530_v7, %v634_v18  ;;  %v219_v12 = vadd.f32 %v538_v8, %v634_v18  ;;  %v178_v13 = vpop.f32.mrb[5].mxu0  ;;  %v210_v14 = vpop.f32.mrb[5].mxu1 }
  0xe7   :  { %v459_v15 = vpack.c.bf16 %v274_v5, %v273_v3  ;;  %v479_v16 = vpack.c.bf16 %v282_v6, %v281_v4  ;;  %v179_v17 = vadd.f32 %v634_v18, %v178_v13  ;;  %v211_v19 = vadd.f32 %v634_v18, %v210_v14  ;;  %v531_v20 = vpop.f32.mrb[6].mxu0  ;;  %v539_v21 = vpop.f32.mrb[6].mxu1 }
  0xe8   :  { %503 = vst [vmem:[%s708_s4 + $0x8] sm:$0xff] %v464_v9   ;;  %507 = vst [vmem:[%s708_s4 + $0x28] sm:$0xff] %v484_v10   ;;  %v263_v22 = vadd.f32 %v438_v37, %v187_v11  ;;  %v271_v23 = vadd.f32 %v454_v38, %v219_v12  ;;  %v190_v24 = vadd.f32 %v531_v20, %v634_v18  ;;  %v181_v26 = vpop.f32.mrb[7].mxu0  ;;  %v213_v27 = vpop.f32.mrb[7].mxu1 }
  0xe9   :  { %v222_v25 = vadd.f32 %v539_v21, %v634_v18  ;;  %460 = vst [vmem:[%s708_s4] sm:$0xff] %v459_v15   ;;  %506 = vst [vmem:[%s708_s4 + $0x20] sm:$0xff] %v479_v16   ;;  %v261_v28 = vadd.f32 %v434_v43, %v179_v17  ;;  %v269_v29 = vadd.f32 %v450_v44, %v211_v19 }
  0xea   :  { %v182_v30 = vadd.f32 %v634_v18, %v181_v26  ;;  %v214_v31 = vadd.f32 %v634_v18, %v213_v27  ;;  %v264_v32 = vadd.f32 %v439_v57, %v190_v24  ;;  %v279_v36 = vmax.f32 %v263_v22, 0.0 }
  0xeb   :  { %v272_v33 = vadd.f32 %v455_v58, %v222_v25  ;;  %v287_v37 = vmax.f32 %v271_v23, 0.0  ;;  %v277_v40 = vmax.f32 %v261_v28, 0.0  ;;  %v285_v41 = vmax.f32 %v269_v29, 0.0 }
  0xec   :  { %v262_v34 = vadd.f32 %v435_v61, %v182_v30  ;;  %v270_v35 = vadd.f32 %v451_v62, %v214_v31  ;;  %v280_v38 = vmax.f32 %v264_v32, 0.0 }
  0xed   :  { %v288_v39 = vmax.f32 %v272_v33, 0.0 }
  0xee   :  { %v278_v42 = vmax.f32 %v262_v34, 0.0  ;;  %v286_v45 = vmax.f32 %v270_v35, 0.0  ;;  %v474_v46 = vpack.c.bf16 %v280_v38, %v279_v36 }
  0xef   :  { %v494_v47 = vpack.c.bf16 %v288_v39, %v287_v37 }
  0xf0   :  { %v469_v43 = vpack.c.bf16 %v278_v42, %v277_v40  ;;  %v489_v44 = vpack.c.bf16 %v286_v45, %v285_v41  ;;  %505 = vst [vmem:[%s708_s4 + $0x18] sm:$0xff] %v474_v46  }
  0xf1   :  { %509 = vst [vmem:[%s708_s4 + $0x38] sm:$0xff] %v494_v47  }
  0xf2   :  { %504 = vst [vmem:[%s708_s4 + $0x10] sm:$0xff] %v469_v43   ;;  %508 = vst [vmem:[%s708_s4 + $0x30] sm:$0xff] %v489_v44  }

// kernel: squeeze.1
= control target key start
LH: loop header
LB: loop body
LE: loop exit
PB: predicated region body
PF: predicated region fallthrough
CT: control target
= control target key end

     0   :  { %s71_s8 = smov 116   ;;  %vm7_vm0 = vcmask 31744   ;;  %s72_s9 = smov 120   ;;  %s104_s0 = inlined_call_operand.vmem [shape: f32[32], index: 0, kind: input, shape index: {}]   ;;  %s105_s1 = inlined_call_operand.vmem [shape: f32[2,4,4], index: 1, kind: output, shape index: {}]  }
   0x1   :  { %v4_v0 = vld [vmem:[%s104_s0] sm:$0x1]  ;;  %s70_s0 = smov 124   ;;  %s73_s10 = smov 112  }
   0x2   :  { %5 = vst [vmem:[#allocation1] sm:$0x1] %v4_v0  ;;  %s74_s11 = smov 108   ;;  %s75_s12 = smov 104  }
   0x3   :  { %s76_s13 = smov 100  }
   0x9   :  { %v9_v1 = vld [vmem:[#allocation1] sm:$0x1]  }
   0xa   :  { %v21_v2 = vld [vmem:[#allocation1] sm:$0x1]   ;;  %10 = vrot.lane.b32.xlu0 %v9_v1, %s70_s0 }
   0xb   :  { %22 = vrot.lane.b32.xlu1 %v21_v2, %s71_s8  ;;  %v15_v3 = vld [vmem:[#allocation1] sm:$0x1]  }
   0xc   :  { %v27_v4 = vld [vmem:[#allocation1] sm:$0x1]  }
   0xd   :  { %v6_v5 = vld [vmem:[#allocation1] sm:$0x1]  }
   0xe   :  { %8 = vst.msk [vmem:[#allocation0] sm:$0x1] %vm7_vm0, %v6_v5   ;;  %16 = vrot.lane.b32.xlu0 %v15_v3, %s72_s9  ;;  %v33_v6 = vld [vmem:[#allocation1] sm:$0x1]  }
   0xf   :  { %28 = vrot.lane.b32.xlu1 %v27_v4, %s73_s10  ;;  %v39_v7 = vld [vmem:[#allocation1] sm:$0x1]  }
  0x10   :  { %v45_v8 = vld [vmem:[#allocation1] sm:$0x1]  }
  0x12   :  { %34 = vrot.lane.b32.xlu0 %v33_v6, %s74_s11 }
  0x13   :  { %40 = vrot.lane.b32.xlu1 %v39_v7, %s75_s12 }
  0x16   :  { %46 = vrot.lane.b32.xlu0 %v45_v8, %s76_s13 }
  0x7c   :  { %v11_v9 = vpop.permute.xlu0 %10  }
  0x7d   :  { %v23_v10 = vpop.permute.xlu1 %22   ;;  %14 = vst.msk [vmem:[#allocation0 + $0x1] sm:$0x1] %vm7_vm0, %v11_v9  }
  0x7e   :  { %26 = vst.msk [vmem:[#allocation0 + $0x3] sm:$0x1] %vm7_vm0, %v23_v10  }
  0x80   :  { %v17_v11 = vpop.permute.xlu0 %16  }
  0x81   :  { %v29_v12 = vpop.permute.xlu1 %28   ;;  %20 = vst.msk [vmem:[#allocation0 + $0x2] sm:$0x1] %vm7_vm0, %v17_v11  }
  0x82   :  { %32 = vst.msk [vmem:[#allocation0 + $0x8] sm:$0x1] %vm7_vm0, %v29_v12  }
  0x84   :  { %v35_v13 = vpop.permute.xlu0 %34  }
  0x85   :  { %v41_v14 = vpop.permute.xlu1 %40   ;;  %38 = vst.msk [vmem:[#allocation0 + $0x9] sm:$0x1] %vm7_vm0, %v35_v13  }
  0x86   :  { %44 = vst.msk [vmem:[#allocation0 + $0xa] sm:$0x1] %vm7_vm0, %v41_v14  }
  0x88   :  { %v54_v15 = vld [vmem:[#allocation0] sm:$0xf]  ;;  %v47_v16 = vpop.permute.xlu0 %46  }
  0x89   :  { %56 = vst [vmem:[%s105_s1] sm:$0xf] %v54_v15  ;;  %50 = vst.msk [vmem:[#allocation0 + $0xb] sm:$0x1] %vm7_vm0, %v47_v16  }
  0x90   :  { %v58_v17 = vld [vmem:[#allocation0 + $0x8] sm:$0xf] }
  0x91   :  { %62 = vst [vmem:[%s105_s1 + $0x4] sm:$0xf] %v58_v17 }

// kernel: hrnet_is_forward.10
= control target key start
LH: loop header
LB: loop body
LE: loop exit
PB: predicated region body
PF: predicated region fallthrough
CT: control target
= control target key end

     0   :  { %vm60_vm0 = vcmask 392192   ;;  %s202_s1 = inlined_call_operand.vmem [shape: bf16[48,128], index: 1, kind: input, shape index: {}]   ;;  %s203_s0 = inlined_call_operand.vmem [shape: bf16[32,48], index: 0, kind: input, shape index: {}]   ;;  %s204_s2 = inlined_call_operand.vmem [shape: f32[1,128], index: 2, kind: input, shape index: {}]   ;;  %s205_s3 = inlined_call_operand.vmem [shape: f32[32,128], index: 3, kind: output, shape index: {}]  }
   0x1   :  { %v147_v0 = vld [vmem:[%s202_s1] sm:$0xff]   ;;  %v148_v1 = vld [vmem:[%s202_s1 + $0x8] sm:$0xff]   ;;  %v149_v3 = vld [vmem:[%s202_s1 + $0x10] sm:$0xff]  }
   0x2   :  { %137 = vmatprep.subr.bf16.mxu0 %v147_v0  ;;  %v150_v2 = vld [vmem:[%s203_s0] sm:$0xff]   ;;  %v151_v4 = vld [vmem:[%s203_s0 + $0x8] sm:$0xff]  }
   0x3   :  { %138 = vmatpush3.bf16.msra.mxu0 %v147_v0  ;;  %143 = vmatprep.mubr.msk.bf16.mxu0 %vm60_vm0, %v150_v2  ;;  %v124_v5 = vld [vmem:[%s204_s2] ss:$0 sm:$0xff] }
   0x4   :  { %139 = vmatprep.subr.bf16.mxu0 %v148_v1 }
   0x7   :  { %140 = vmatpush3.bf16.msra.mxu0 %v148_v1 }
   0x8   :  { %141 = vmatprep.subr.bf16.mxu0 %v149_v3 }
   0xb   :  { %142 = vmatpush3.bf16.msra.mxu0 %v149_v3 }
   0xe   :  { %144 = vmatmul.mubr.msk.bf16.vlgmr.msra.gmra.mrb[0].mxu0 %vm60_vm0, %v151_v4 }
  0xe1   :  { %v145_v6 = vpop.f32.mrb[0].mxu0 }
  0xe2   :  { %v110_v7 = vadd.f32 %v145_v6, %v124_v5  ;;  %v101_v8 = vpop.f32.mrb[1].mxu0 }
  0xe3   :  { %v102_v9 = vadd.f32 %v124_v5, %v101_v8  ;;  %v146_v10 = vpop.f32.mrb[2].mxu0 }
  0xe4   :  { %118 = vst [vmem:[%s205_s3 + $0x10] sm:$0xff] %v110_v7  ;;  %v113_v11 = vadd.f32 %v146_v10, %v124_v5  ;;  %v104_v12 = vpop.f32.mrb[3].mxu0 }
  0xe5   :  { %116 = vst [vmem:[%s205_s3] sm:$0xff] %v102_v9  ;;  %v105_v13 = vadd.f32 %v124_v5, %v104_v12 }
  0xe6   :  { %119 = vst [vmem:[%s205_s3 + $0x18] sm:$0xff] %v113_v11 }
  0xe7   :  { %117 = vst [vmem:[%s205_s3 + $0x8] sm:$0xff] %v105_v13 }

// kernel: hrnet_is_forward.9
= control target key start
LH: loop header
LB: loop body
LE: loop exit
PB: predicated region body
PF: predicated region fallthrough
CT: control target
= control target key end

     0   :  { %vm372_vm0 = vcmask 523264   ;;  %s913_s1 = inlined_call_operand.vmem [shape: bf16[576,128], index: 1, kind: input, shape index: {}]   ;;  %s914_s0 = inlined_call_operand.vmem [shape: bf16[32,576], index: 0, kind: input, shape index: {}]   ;;  %s915_s2 = inlined_call_operand.vmem [shape: f32[1,128], index: 2, kind: input, shape index: {}]   ;;  %s916_s3 = inlined_call_operand.vmem [shape: bf16[32,128], index: 3, kind: output, shape index: {}]  }
   0x1   :  { %v696_v0 = vld [vmem:[%s913_s1 + $0x40] sm:$0xff]   ;;  %v700_v4 = vld [vmem:[%s913_s1 + $0x48] sm:$0xff]   ;;  %v704_v8 = vld [vmem:[%s913_s1 + $0x50] sm:$0xff]  }
   0x2   :  { %v697_v1 = vld [vmem:[%s913_s1] sm:$0xff]   ;;  %622 = vmatprep.subr.bf16.mxu0 %v696_v0  ;;  %v701_v5 = vld [vmem:[%s913_s1 + $0x8] sm:$0xff]   ;;  %v705_v9 = vld [vmem:[%s913_s1 + $0x10] sm:$0xff]  }
   0x3   :  { %v698_v2 = vld [vmem:[%s913_s1 + $0xc0] sm:$0xff]   ;;  %623 = vmatpush3.bf16.msra.mxu0 %v697_v1  ;;  %v702_v6 = vld [vmem:[%s913_s1 + $0xc8] sm:$0xff]   ;;  %v706_v10 = vld [vmem:[%s913_s1 + $0xd0] sm:$0xff]  }
   0x4   :  { %v699_v3 = vld [vmem:[%s913_s1 + $0x80] sm:$0xff]   ;;  %650 = vmatprep.subr.bf16.mxu1 %v698_v2  ;;  %624 = vmatprep.subr.bf16.mxu0 %v700_v4  ;;  %v703_v7 = vld [vmem:[%s913_s1 + $0x88] sm:$0xff]   ;;  %v707_v11 = vld [vmem:[%s913_s1 + $0x90] sm:$0xff]  }
   0x5   :  { %651 = vmatpush3.bf16.msra.mxu1 %v699_v3  ;;  %v708_v12 = vld [vmem:[%s913_s1 + $0x58] sm:$0xff]   ;;  %v712_v16 = vld [vmem:[%s913_s1 + $0x60] sm:$0xff]   ;;  %v716_v20 = vld [vmem:[%s913_s1 + $0x68] sm:$0xff]  }
   0x6   :  { %652 = vmatprep.subr.bf16.mxu1 %v702_v6  ;;  %v709_v13 = vld [vmem:[%s913_s1 + $0x18] sm:$0xff]   ;;  %v713_v17 = vld [vmem:[%s913_s1 + $0x20] sm:$0xff]   ;;  %v717_v21 = vld [vmem:[%s913_s1 + $0x28] sm:$0xff]  }
   0x7   :  { %625 = vmatpush3.bf16.msra.mxu0 %v701_v5  ;;  %v710_v14 = vld [vmem:[%s913_s1 + $0xd8] sm:$0xff]   ;;  %v714_v18 = vld [vmem:[%s913_s1 + $0xe0] sm:$0xff]   ;;  %v718_v22 = vld [vmem:[%s913_s1 + $0xe8] sm:$0xff]  }
   0x8   :  { %626 = vmatprep.subr.bf16.mxu0 %v704_v8  ;;  %v711_v15 = vld [vmem:[%s913_s1 + $0x98] sm:$0xff]   ;;  %v715_v19 = vld [vmem:[%s913_s1 + $0xa0] sm:$0xff]   ;;  %v719_v23 = vld [vmem:[%s913_s1 + $0xa8] sm:$0xff]  }
   0x9   :  { %653 = vmatpush3.bf16.msra.mxu1 %v703_v7  ;;  %v720_v24 = vld [vmem:[%s913_s1 + $0x70] sm:$0xff]   ;;  %v724_v28 = vld [vmem:[%s913_s1 + $0x78] sm:$0xff]   ;;  %v731_v34 = vld [vmem:[%s913_s1 + $0x100] sm:$0xff]  }
   0xa   :  { %654 = vmatprep.subr.bf16.mxu1 %v706_v10  ;;  %v721_v25 = vld [vmem:[%s913_s1 + $0x30] sm:$0xff]   ;;  %v725_v29 = vld [vmem:[%s913_s1 + $0x38] sm:$0xff]   ;;  %v734_v36 = vld [vmem:[%s914_s0 + $0xc] ss:$20 sps:$4 sm:$0xff]  }
   0xb   :  { %627 = vmatpush3.bf16.msra.mxu0 %v705_v9  ;;  %v722_v26 = vld [vmem:[%s913_s1 + $0xf0] sm:$0xff]   ;;  %v726_v30 = vld [vmem:[%s913_s1 + $0xf8] sm:$0xff]   ;;  %v735_v37 = vld [vmem:[%s913_s1 + $0x108] sm:$0xff]   ;;  %460 = vmatprep.mubr.bf16.mxu1 %v734_v36 }
   0xc   :  { %628 = vmatprep.subr.bf16.mxu0 %v708_v12  ;;  %v723_v27 = vld [vmem:[%s913_s1 + $0xb0] sm:$0xff]   ;;  %v729_v32 = vld [vmem:[%s914_s0 + $0x4] ss:$20 sps:$4 sm:$0xff]   ;;  %v732_v35 = vld [vmem:[%s914_s0 + $0x8] ss:$20 sps:$4 sm:$0xff]  }
   0xd   :  { %655 = vmatpush3.bf16.msra.mxu1 %v707_v11  ;;  %v727_v31 = vld [vmem:[%s914_s0] ss:$20 sps:$4 sm:$0xff]   ;;  %v730_v33 = vld [vmem:[%s913_s1 + $0xb8] sm:$0xff]   ;;  %411 = vmatprep.mubr.bf16.mxu0 %v729_v32  ;;  %v742_v42 = vld [vmem:[%s914_s0 + $0x30] ss:$20 sps:$4 sm:$0xff]  }
   0xe   :  { %656 = vmatprep.subr.bf16.mxu1 %v710_v14  ;;  %v736_v38 = vld [vmem:[%s914_s0 + $0x2c] ss:$20 sps:$4 sm:$0xff]   ;;  %v738_v39 = vld [vmem:[%s914_s0 + $0x28] ss:$20 sps:$4 sm:$0xff]   ;;  %v739_v40 = vld [vmem:[%s913_s1 + $0x110] sm:$0xff]  }
   0xf   :  { %629 = vmatpush3.bf16.msra.mxu0 %v709_v13  ;;  %v740_v41 = vld [vmem:[%s914_s0 + $0x34] ss:$20 sps:$4 sm:$0xff]   ;;  %v743_v43 = vld [vmem:[%s913_s1 + $0x118] sm:$0xff]   ;;  %v744_v44 = vld [vmem:[%s914_s0 + $0x10] ss:$20 sps:$4 sm:$0xff]  }
  0x10   :  { %630 = vmatprep.subr.bf16.mxu0 %v712_v16  ;;  %v745_v45 = vld [vmem:[%s914_s0 + $0x38] ss:$20 sps:$4 sm:$0xff]   ;;  %v554_v47 = vld [vmem:[%s915_s2] ss:$0 sm:$0xff] }
  0x11   :  { %657 = vmatpush3.bf16.msra.mxu1 %v711_v15 }
  0x12   :  { %658 = vmatprep.subr.bf16.mxu1 %v714_v18 }
  0x13   :  { %631 = vmatpush3.bf16.msra.mxu0 %v713_v17 }
  0x14   :  { %632 = vmatprep.subr.bf16.mxu0 %v716_v20 }
  0x15   :  { %659 = vmatpush3.bf16.msra.mxu1 %v715_v19 }
  0x16   :  { %660 = vmatprep.subr.bf16.mxu1 %v718_v22 }
  0x17   :  { %633 = vmatpush3.bf16.msra.mxu0 %v717_v21 }
  0x18   :  { %634 = vmatprep.subr.bf16.mxu0 %v720_v24 }
  0x19   :  { %661 = vmatpush3.bf16.msra.mxu1 %v719_v23 }
  0x1a   :  { %662 = vmatprep.subr.bf16.mxu1 %v722_v26 }
  0x1b   :  { %635 = vmatpush3.bf16.msra.mxu0 %v721_v25 }
  0x1c   :  { %636 = vmatprep.subr.bf16.mxu0 %v724_v28 }
  0x1d   :  { %663 = vmatpush3.bf16.msra.mxu1 %v723_v27 }
  0x1e   :  { %664 = vmatprep.subr.bf16.mxu1 %v726_v30 }
  0x1f   :  { %637 = vmatpush3.bf16.msra.mxu0 %v725_v29 }
  0x20   :  { %684 = vmatprep.subr.bf16.mxu0 %v731_v34 }
  0x21   :  { %665 = vmatpush3.bf16.msra.mxu1 %v730_v33 }
  0x22   :  { %412 = vmatmul.mubr.bf16.vlgmr.msra.gmra.mrb[0].mxu0 %v727_v31 }
  0x23   :  { %685 = vmatpush3.bf16.msra.mxu0 %v731_v34  ;;  %419 = vmatprep.mubr.bf16.mxu0 %v736_v38 }
  0x24   :  { %461 = vmatmul.mubr.bf16.vlgmr.msra.gmra.mrb[0].mxu1 %v732_v35  ;;  %686 = vmatprep.subr.bf16.mxu0 %v735_v37 }
  0x25   :  { %468 = vmatprep.mubr.bf16.mxu1 %v740_v41 }
  0x27   :  { %687 = vmatpush3.bf16.msra.mxu0 %v735_v37 }
  0x28   :  { %688 = vmatprep.subr.bf16.mxu0 %v739_v40 }
  0x2a   :  { %420 = vmatmul.mubr.bf16.gmra.mrb[4].mxu0 %v738_v39 }
  0x2b   :  { %692 = vmatprep.mubr.msk.bf16.mxu0 %vm372_vm0, %v744_v44  ;;  %689 = vmatpush3.bf16.msra.mxu0 %v739_v40 }
  0x2c   :  { %469 = vmatmul.mubr.bf16.gmra.mrb[4].mxu1 %v742_v42  ;;  %690 = vmatprep.subr.bf16.mxu0 %v743_v43 }
  0x2f   :  { %691 = vmatpush3.bf16.msra.mxu0 %v743_v43 }
  0x32   :  { %693 = vmatmul.mubr.msk.bf16.vlgmr.msra.gmra.mrb[8].mxu0 %vm372_vm0, %v745_v45 }
  0xf5   :  { %v638_v46 = vpop.f32.mrb[0].mxu0 }
  0xf6   :  { %v639_v48 = vpop.f32.mrb[1].mxu0 }
  0xf7   :  { %v640_v49 = vadd.f32 %v639_v48, %v638_v46  ;;  %v641_v50 = vpop.f32.mrb[2].mxu0  ;;  %v666_v51 = vpop.f32.mrb[0].mxu1 }
  0xf8   :  { %v642_v52 = vpop.f32.mrb[3].mxu0  ;;  %v667_v55 = vpop.f32.mrb[1].mxu1 }
  0xf9   :  { %v414_v53 = vadd.f32 %v640_v49, %v554_v47  ;;  %v643_v54 = vadd.f32 %v642_v52, %v641_v50  ;;  %v668_v56 = vadd.f32 %v667_v55, %v666_v51  ;;  %v669_v57 = vpop.f32.mrb[2].mxu1 }
  0xfa   :  { %v670_v59 = vpop.f32.mrb[3].mxu1 }
  0xfb   :  { %v417_v58 = vadd.f32 %v643_v54, %v554_v47  ;;  %v671_v60 = vadd.f32 %v670_v59, %v669_v57  ;;  %v463_v61 = vadd.f32 %v668_v56, %v414_v53 }
  0xfd   :  { %v644_v62 = vpop.f32.mrb[4].mxu0  ;;  %v466_v0 = vadd.f32 %v671_v60, %v417_v58 }
  0xfe   :  { %v645_v63 = vpop.f32.mrb[5].mxu0 }
  0xff   :  { %v646_v1 = vadd.f32 %v645_v63, %v644_v62  ;;  %v647_v2 = vpop.f32.mrb[6].mxu0  ;;  %v672_v3 = vpop.f32.mrb[4].mxu1 }
 0x100   :  { %v648_v4 = vpop.f32.mrb[7].mxu0  ;;  %v673_v7 = vpop.f32.mrb[5].mxu1 }
 0x101   :  { %v422_v5 = vadd.f32 %v646_v1, %v554_v47  ;;  %v649_v6 = vadd.f32 %v648_v4, %v647_v2  ;;  %v674_v8 = vadd.f32 %v673_v7, %v672_v3  ;;  %v675_v9 = vpop.f32.mrb[6].mxu1 }
 0x102   :  { %v676_v11 = vpop.f32.mrb[7].mxu1 }
 0x103   :  { %v425_v10 = vadd.f32 %v649_v6, %v554_v47  ;;  %v677_v12 = vadd.f32 %v676_v11, %v675_v9  ;;  %v471_v13 = vadd.f32 %v674_v8, %v422_v5 }
 0x105   :  { %v694_v14 = vpop.f32.mrb[8].mxu0  ;;  %v474_v15 = vadd.f32 %v677_v12, %v425_v10 }
 0x106   :  { %v520_v16 = vadd.f32 %v694_v14, %v471_v13  ;;  %v511_v17 = vpop.f32.mrb[9].mxu0 }
 0x107   :  { %v512_v18 = vadd.f32 %v511_v17, %v463_v61  ;;  %v695_v19 = vpop.f32.mrb[10].mxu0 }
 0x108   :  { %v523_v20 = vadd.f32 %v695_v19, %v474_v15  ;;  %v514_v21 = vpop.f32.mrb[11].mxu0  ;;  %v528_v23 = vmax.f32 %v520_v16, 0.0 }
 0x109   :  { %v515_v22 = vadd.f32 %v514_v21, %v466_v0  ;;  %v526_v25 = vmax.f32 %v512_v18, 0.0 }
 0x10a   :  { %v529_v24 = vmax.f32 %v523_v20, 0.0 }
 0x10b   :  { %v527_v26 = vmax.f32 %v515_v22, 0.0 }
 0x10c   :  { %v619_v27 = vpack.c.bf16 %v529_v24, %v528_v23 }
 0x10d   :  { %v614_v28 = vpack.c.bf16 %v527_v26, %v526_v25 }
 0x10e   :  { %621 = vst [vmem:[%s916_s3 + $0x8] sm:$0xff] %v619_v27  }
 0x10f   :  { %615 = vst [vmem:[%s916_s3] sm:$0xff] %v614_v28  }

// kernel: hrnet_is_forward.11
= control target key start
LH: loop header
LB: loop body
LE: loop exit
PB: predicated region body
PF: predicated region fallthrough
CT: control target
= control target key end

     0   :  { %8 = vsyncpa [#allocation3], 0  ;;  %s697_s0 = inlined_call_operand.vmem [shape: f32[16,4], index: 0, kind: input, shape index: {}]   ;;  %s698_s1 = inlined_call_operand.vmem [shape: f32[4,16], index: 1, kind: input, shape index: {}]   ;;  %s699_s2 = inlined_call_operand.vmem [shape: f32[2,4,4], index: 2, kind: input, shape index: {}]   ;;  %s700_s3 = inlined_call_operand.hbm [shape: f32[2,16,16], index: 3, kind: output, shape index: {}]  }
   0x1   :  { %10 = vsyncpa [#allocation3 + $0x1], 0  ;;  %s581_s12 = smov 0   ;;  %s583_s13 = smov 0  }
   0x2   :  { %s585_s14 = smov 0   ;;  %s587_s15 = smov 0  }
   0x3 LB: > { %s602_s16 = sadd.s32 4294967295, %s556_s15   ;;  %s419_s17 = sadd.s32 4294967294, %s556_s15   ;;  %s556_s15 = sphi %s587_s15, %s706_s15   ;;  %s552_s14 = sphi %s585_s14, %s705_s14   ;;  %s548_s13 = sphi %s583_s13, %s704_s13   ;;  %s544_s12 = sphi %s581_s12, %s703_s12  }
   0x4   : > { %s606_s18 = sadd.s32 1, %s556_s15   ;;  %s91_s19 = sadd.s32 1, %s552_s14 }
   0x5   : > { %s88_s20 = ssub.s32 %s556_s15, %s606_s18  ;;  %p101_p0 = scmp.ne.s32.totalorder %s552_s14, %s548_s13 }
   0x6   : > { %p89_p1 = scmp.eq.s32.totalorder %s88_s20, 0  ;;  %p102_p2 = scmp.eq.s32.totalorder %s602_s16, 1 }
   0x7   : > { %p107_p3 = scmp.ne.s32.totalorder %s548_s13, %s544_s12  ;;  %p108_p4 = scmp.eq.s32.totalorder %s419_s17, 1 }
   0x8   : > { %s617_s21 = scalar_select %p89_p1, %s552_s14, %s91_s19  }
   0x9   : > { %p619_p5 = por %p102_p2, %p101_p0  ;;  %p623_p6 = por %p108_p4, %p107_p3 }
   0xa   : > { %p422_p7 = scmp.ge.s32.totalorder %s556_s15, 1  ;;  %p139_p8 = scmp.lt.s32.totalorder %s556_s15, 3 }
   0xc   : > { %p140_p9 = pnand %p422_p7, %p139_p8 }
   0xd   : > { %p162_p10 = scmp.lt.s32.totalorder (!%p140_p9), %s602_s16, 1  ;;  %v167_v0 = vld [vmem:[%s697_s0] sm:$0xff] (!%p140_p9)  ;;  %vm169_vm0 = vcmask (!%p140_p9), 31744   ;;  %vm176_vm1 = vcmask (!%p140_p9), 1043456   ;;  %v168_v2 = vld [vmem:[%s697_s0 + $0x8] sm:$0xff] (!%p140_p9)  ;;  %s159_s8 = sand.u32 (!%p140_p9), 1, %s548_s13  }
   0xe   : > { %143 = sbr.rel (%p140_p9) target bundleno = 470 (0x1d6), region = 32  ;;  %445 = vmatprep.mubr.msk.f32.mxu0 (!%p140_p9), %vm169_vm0, %v167_v0  ;;  %v255_v3 = vld [vmem:[%s698_s1] sm:$0xf] (!%p140_p9)  ;;  %s423_s9 = sshll.u32 (!%p140_p9), %s159_s8, 4  ;;  %vm340_vm2 = vcmask (!%p140_p9), 130048  }
   0xf   : > { %448 = vmatprep.subr.msk.mxu1 (!%p140_p9), %vm176_vm1, %v255_v3  ;;  %s161_s10 = scalar_lea.vmem (!%p140_p9), [#allocation2], %s423_s9  ;;  %s436_s17 = sshll.u32 (!%p140_p9), %s602_s16, 8 }
  0x10   : > { %449 = vmatpush3.msk.msra.mxu1 (!%p140_p9), %vm176_vm1, %v255_v3  ;;  %s357_s11 = sshll.u32 (!%p140_p9), %s161_s10, 4  ;;  %s654_s24 = scalar_lea.hbm (!%p140_p9), %s700_s3, %s436_s17  ;;  %s649_s11 = int_to_ptr.vmem [resolvable:$true] %s357_s11 }
  0x11   : > { %s656_s25 = scalar_lea.sflag (!%p140_p9), [#allocation3], %s159_s8 }
  0x15   : > { %s163_s26 = scalar_select %p162_p10, %s602_s16, 1 }
  0x16   : > { %s558_s16 = smov [#allocation2]  }
  0x17   : > { %s424_s27 = sshll.u32 %s163_s26, 2  ;;  %s494_s26 = scalar_lea.vmem %s649_s11, 256 }
  0x18   : > { %s165_s30 = scalar_lea.vmem %s699_s2, %s424_s27  ;;  %p495_p11 = scmp.ne.s32.totalorder %s649_s11, %s494_s26 }
  0x19   : > { %v166_v1 = vld [vmem:[%s165_s30] sm:$0xf]  ;;  %s498_s27 = sshll.u32 %s558_s16, 4  ;;  %s499_s27 = int_to_ptr.vmem [resolvable:$false] %s498_s27 }
  0x1a   : > { %443 = vmatprep.subr.msk.mxu0 %vm176_vm1, %v166_v1  ;;  %p496_p12 = pnand %p495_p11, %p619_p5  ;;  %s500_s28 = scalar_lea.vmem %s499_s27, 512 }
  0x1b   : > { %444 = vmatpush3.msk.msra.mxu0 %vm176_vm1, %v166_v1  ;;  %p501_p0 = scmp.lt.s32.totalorder %s649_s11, %s499_s27  ;;  %p502_p1 = scmp.lt.s32.totalorder %s500_s28, %s494_s26 }
  0x1c   : > { %446 = vmatmul.mubr.msk.f32.vlgmr.msra.gmra.mrb[0].mxu0 %vm169_vm0, %v168_v2  ;;  %p497_p13 = pneg %p496_p12 }
  0x1d   : > { %p503_p2 = por %p502_p1, %p501_p0 }
  0x1f   : > { %p504_p3 = pnand %p503_p2, %p497_p13 }
  0xef   : > { %v447_v4 = vpop.f32.mrb[0].mxu0 }
  0xf0   : > { %v246_v5 = vpop.f32.mrb[1].mxu0 }
  0xf1   : > { %450 = vmatprep.mubr.msk.f32.mxu1 %vm169_vm0, %v246_v5 }
  0xf2   : > { %451 = vmatmul.mubr.msk.f32.vlgmr.msra.gmra.mrb[0].mxu1 %vm169_vm0, %v447_v4 }
 0x1c5   : > { %v452_v6 = vpop.f32.mrb[0].mxu1 }
 0x1c6   : > { %342 = vst.msk [vmem:[%s161_s10 + $0x8] sm:$0xff] %vm340_vm2, %v452_v6  ;;  %v331_v7 = vpop.f32.mrb[1].mxu1 }
 0x1c7   : > { %341 = vst.msk [vmem:[%s161_s10] sm:$0xff] %vm340_vm2, %v331_v7 }
 0x1c8   : > { %507 = shalt.err (!%p504_p3)
}
 0x1c9   : > { %s508_s29 = scalar_lea.hbm %s654_s24, 256  ;;  %s512_s5 = scalar_lea.hbm %s700_s3, 512 }
 0x1ca   : > { %p509_p4 = scmp.ne.s32.totalorder %s654_s24, %s508_s29  ;;  %p513_p9 = scmp.lt.u32.totalorder %s654_s24, %s700_s3 }
 0x1cb   : > { %p514_p10 = scmp.lt.u32.totalorder %s512_s5, %s508_s29  ;;  %p516_p12 = scmp.lt.u32.totalorder %s508_s29, %s654_s24 }
 0x1cc   : > { %p510_p7 = pnand %p509_p4, %p619_p5 }
 0x1cd   : > { %p515_p11 = por %p514_p10, %p513_p9 }
 0x1ce   : > { %p511_p8 = pneg %p510_p7 }
 0x1cf   : > { %p517_p13 = por %p516_p12, %p515_p11 }
 0x1d1   : > { %p518_p0 = pnand %p517_p13, %p511_p8 }
 0x1d3   : > { %521 = shalt.err (!%p518_p0)
}
 0x1d4   : > { %s559_s8 = smov 128   ;;  %s560_s9 = smov 8  }
 0x1d5   : > { %453 = dma.vmem_to_hbm [thread:$0]  (%p619_p5), %s649_s11, 256, %s654_s24, %s656_s25, %s559_s8, %s559_s8, %s560_s9  }
 0x1d6 PF: > { %p459_p1 = scmp.ge.s32.totalorder %s556_s15, 2  ;;  %s372_s10 = sand.u32 1, %s544_s12  }
 0x1d7   : > { %s373_s17 = scalar_lea.sflag [#allocation3], %s372_s10 }
 0x1d8   : > { %p456_p2 = pnand %p459_p1, %p623_p6 }
 0x1da   : > { %539 = dma.done.wait (!%p456_p2), %s373_s17, 256  }
 0x1db   : > { %541 = vsyncadd (!%p456_p2), %s373_s17, 4294967040  ;;  %p13_p3 = scmp.ge.s32.totalorder %s606_s18, 4   ;;  %s703_s12 = smov %s548_s13 }
 0x1dc   : > { %s704_s13 = smov %s552_s14  ;;  %s705_s14 = smov %s617_s21 }
 0x1dd   : > { %s706_s15 = smov %s606_s18  ;;  %15 = sbr.rel (!%p13_p3) target bundleno = 3 (0x3), region = 67 }
 0x1e4   :  { %378 = vsyncpa [#allocation3], 1 }
 0x1e5   :  { %380 = vsyncpa [#allocation3 + $0x1], 1 }

</bundles_post_ra>
